<compile_context>
chip_gen: v7x
topology: tpu7x:2x2x1
jax: 0.10.0
libtpu: 0.0.40
codegen_flags: <defaults>
</compile_context>

<pallas_src>
import functools

import jax
import jax.numpy as jnp
from jax.experimental import pallas as pl
from jax.experimental.pallas import tpu as pltpu


# ----------------------------------------------------------------------------
# small helpers
# ----------------------------------------------------------------------------
def _largest_aligned_divisor(total, align, cap):
    """Largest divisor of `total` that is a multiple of `align` and <= cap.
    Falls back to `total` when no such divisor exists (e.g. total < align)."""
    best = None
    d = align
    while d <= min(total, cap):
        if total % d == 0:
            best = d
        d += align
    return best if best is not None else total


def _volume_dtype():
    # bf16 halves HBM traffic of the dominant (warp-volume) tensor; keep f32 on v5
    # (no bf16 VALU -> no win) and on anything we cannot identify.
    try:
        kind = jax.devices()[0].device_kind.lower()
    except Exception:
        return jnp.float32
    return jnp.bfloat16 if ("v6" in kind or "v7" in kind) else jnp.float32


# ----------------------------------------------------------------------------
# Pallas kernel 1: 3x3 SAME conv = 9 rolled planes -> one MXU matmul per block.
# Channels on sublanes, pixels (whole images folded together) on lanes.
# ----------------------------------------------------------------------------
def _conv3x3_kernel(x_ref, w_ref, b_ref, mask_ref, o_ref, *, W, relu):
    # x_ref: (C_in, TP)  pixels on lanes (TP = images_per_block * H*W)
    # w_ref: (C_out, 9*C_in); b_ref: (C_out, 1); mask_ref: (9*C_in, TP)
    x = x_ref[...]
    TP = x.shape[1]
    planes = []
    for ky in range(3):
        for kx in range(3):
            off = (ky - 1) * W + (kx - 1)
            # gathered[p] = x[p + off] (circular); boundary wrap AND cross-image bleed
            # are zeroed by the precomputed mask below.
            planes.append(x if off == 0 else pltpu.roll(x, shift=(-off) % TP, axis=1))
    stacked = jnp.concatenate(planes, axis=0) * mask_ref[...]        # (9*C_in, TP)
    acc = jnp.dot(w_ref[...], stacked, preferred_element_type=jnp.float32)   # MXU
    acc = acc + b_ref[...]                                           # bias lane-splat
    if relu:
        acc = jnp.maximum(acc, 0.0)
    o_ref[...] = acc.astype(o_ref.dtype)


def _make_tap_masks(H, W, c_in, nb):
    # (9*C_in, nb*H*W) validity mask: zero where the shifted tap leaves the image.
    ys, xs = jnp.meshgrid(jnp.arange(H, dtype=jnp.int32),
                          jnp.arange(W, dtype=jnp.int32), indexing='ij')
    rows = []
    for ky in range(3):
        for kx in range(3):
            dy, dx = ky - 1, kx - 1
            valid = ((xs + dx >= 0) & (xs + dx < W) &
                     (ys + dy >= 0) & (ys + dy < H))
            rows.append(valid.reshape(-1))
    m = jnp.stack(rows, axis=0).astype(jnp.float32)   # (9, HW)
    m = jnp.repeat(m, c_in, axis=0)                   # (9*C_in, HW) rows match stacked layout
    return jnp.tile(m, (1, nb))                       # (9*C_in, nb*HW)


def conv3x3_cf_pallas(x_cf, w, b, *, H, W, relu, out_dtype=jnp.float32):
    """3x3 SAME conv.  x_cf: [N, C_in, H*W] -> [N, C_out, H*W]."""
    N, C_in, HW = x_cf.shape
    C_out = w.shape[0]
    assert HW == H * W and HW % 128 == 0
    # Fold as many whole images as fit a ~4 MiB block into the lane axis so a
    # narrow-channel conv (e.g. refine head, C_out=1) still fills the vregs.
    budget = 4 << 20
    per_img = HW * (C_in + C_out) * 4
    nb_cap = max(1, budget // per_img)
    nb = 1
    for d in range(1, N + 1):
        if N % d == 0 and d <= nb_cap:
            nb = d
    TP = nb * HW
    # TODO(synk): for production resolutions additionally tile the pixel axis in row
    # blocks with a 1-row halo so a single block fits v7x's 64 MiB VMEM.
    x_lanes = jnp.transpose(x_cf, (1, 0, 2)).reshape(C_in, N * HW)   # channel-major
    masks = _make_tap_masks(H, W, C_in, nb)                          # grid-invariant

    out = pl.pallas_call(
        functools.partial(_conv3x3_kernel, W=W, relu=relu),
        out_shape=jax.ShapeDtypeStruct((C_out, N * HW), out_dtype),
        grid=(N // nb,),
        in_specs=[
            pl.BlockSpec((C_in, TP), lambda i: (0, i)),
            pl.BlockSpec((C_out, 9 * C_in), lambda i: (0, 0)),
            pl.BlockSpec((C_out, 1), lambda i: (0, 0)),
            pl.BlockSpec((9 * C_in, TP), lambda i: (0, 0)),
        ],
        out_specs=pl.BlockSpec((C_out, TP), lambda i: (0, i)),
        compiler_params=pltpu.CompilerParams(dimension_semantics=("parallel",)),
    )(x_lanes, w, b, masks)
    return jnp.transpose(out.reshape(C_out, N, HW), (1, 0, 2))       # [N, C_out, HW]


# ---------------------------------------------------------------------------------
# Pallas kernel 2: cost-volume correlation + affine regularizer + streamed (online)
# softmax over depth + soft-argmin depth regression + confidence.
# ---------------------------------------------------------------------------------
def _cost_regress_kernel(ref_r, warp_r, dvals_r, wscale_r, wbias_r,
                         depth_o, unc_o, m_sc, l_sc, num_sc, *, inv_norm):
    d_idx = pl.program_id(2)

    @pl.when(d_idx == 0)
    def _():
        m_sc[...] = jnp.full(m_sc.shape, -jnp.inf, dtype=jnp.float32)
        l_sc[...] = jnp.zeros(l_sc.shape, dtype=jnp.float32)
        num_sc[...] = jnp.zeros(num_sc.shape, dtype=jnp.float32)

    r = ref_r[...]                                     # (1, F, TP)   f32
    warp = warp_r[...].astype(jnp.float32)             # (Vs, 1, Dc, F, TP)  (bf16 -> f32)
    # correlation: one fused elementwise multiply + (view, channel) reduce
    cost = jnp.sum(warp * r[None, :, None, :, :], axis=(0, 1, 3)) * inv_norm   # (Dc, TP)
    # TODO(synk): Vis-MVSNet's 3D U-Net cost regularizer replaced by a learned
    # per-depth affine (scale/bias); full 3D convs are out of scope here.
    cost = cost * wscale_r[...] + wbias_r[...]                                  # (Dc, 1) splat

    dvals = dvals_r[0]                                  # (Dc, 1)
    # online softmax over streamed depth chunks + running soft-argmin numerator
    m_prev = m_sc[...]
    m_new = jnp.maximum(m_prev, jnp.max(cost, axis=0, keepdims=True))
    alpha = jnp.exp(m_prev - m_new)
    p = jnp.exp(cost - m_new)                           # (Dc, TP)
    l_sc[...] = alpha * l_sc[...] + jnp.sum(p, axis=0, keepdims=True)
    num_sc[...] = alpha * num_sc[...] + jnp.sum(p * dvals, axis=0, keepdims=True)
    m_sc[...] = m_new

    @pl.when(d_idx == pl.num_programs(2) - 1)
    def _():
        l = l_sc[...]
        depth_o[0] = num_sc[...] / l                    # exact reciprocal for the depth output
        inv_l = pl.reciprocal(l, approx=True)           # EUP slot, uncertainty proxy only
        # max prob over depth = exp(0)/l ; uncertainty = 1 - max prob (clamped for approx)
        unc_o[0] = jnp.clip(1.0 - inv_l, 0.0, 1.0)


def cost_softargmin_pallas(ref_feat, warp_vol, d_vals, w_scale, w_bias):
    # ref_feat: [B, F, HW] f32; warp_vol: [Vs, B, D, F, HW]; d_vals: [B, D, 1]; w_*: [D, 1]
    B, F, HW = ref_feat.shape
    Vs, _, D, _, _ = warp_vol.shape
    # Pick large blocks (amortize per-step overhead + softmax rescales) while keeping
    # the in-kernel f32 working set <= ~4 MiB (safe under every generation's scoped VMEM).
    tile_p = _largest_aligned_divisor(HW, 128, 2048)
    budget_elems = (4 << 20) // 4
    cap_d = max(8, budget_elems // max(1, Vs * F * tile_p))
    d_chunk = _largest_aligned_divisor(D, 8, cap_d)
    assert HW % tile_p == 0 and D % d_chunk == 0
    grid = (B, HW // tile_p, D // d_chunk)

    depth, unc = pl.pallas_call(
        functools.partial(_cost_regress_kernel, inv_norm=1.0 / (Vs * F)),
        out_shape=(jax.ShapeDtypeStruct((B, 1, HW), jnp.float32),
                   jax.ShapeDtypeStruct((B, 1, HW), jnp.float32)),
        grid=grid,
        in_specs=[
            pl.BlockSpec((1, F, tile_p), lambda b, p, d: (b, 0, p)),
            pl.BlockSpec((Vs, 1, d_chunk, F, tile_p), lambda b, p, d: (0, b, d, 0, p)),
            pl.BlockSpec((1, d_chunk, 1), lambda b, p, d: (b, d, 0)),
            pl.BlockSpec((d_chunk, 1), lambda b, p, d: (d, 0)),
            pl.BlockSpec((d_chunk, 1), lambda b, p, d: (d, 0)),
        ],
        out_specs=(pl.BlockSpec((1, 1, tile_p), lambda b, p, d: (b, 0, p)),
                   pl.BlockSpec((1, 1, tile_p), lambda b, p, d: (b, 0, p))),
        scratch_shapes=[pltpu.VMEM((1, tile_p), jnp.float32),
                        pltpu.VMEM((1, tile_p), jnp.float32),
                        pltpu.VMEM((1, tile_p), jnp.float32)],
        compiler_params=pltpu.CompilerParams(
            dimension_semantics=("parallel", "parallel", "arbitrary")),
    )(ref_feat, warp_vol, d_vals, w_scale, w_bias)
    return depth, unc


# ----------------------------------------------------------------------------
# JAX glue: homography warping (plane sweep) of source features, emitted directly
# in the [Vs, B, D, F, HW] layout the cost kernel consumes (single materialization,
# bf16 on v6e/v7x). Single combined 4-corner gather per view.
# ----------------------------------------------------------------------------
def _bilinear_sample_cf(feat_cf, u, v, H, W, out_dtype):
    # feat_cf: [B, F, HW]; u, v: [B, D, P] -> [B, D, F, P]
    # TODO(synk): torch.grid_sample-style data-dependent gather kept in plain JAX;
    # fusing it into the cost kernel needs scalar-prefetched indices + manual DMA gather.
    u0 = jnp.floor(u)
    v0 = jnp.floor(v)
    du = u - u0
    dv = v - v0
    cx = jnp.stack([u0, u0 + 1.0, u0, u0 + 1.0], axis=1)          # [B,4,D,P]
    cy = jnp.stack([v0, v0, v0 + 1.0, v0 + 1.0], axis=1)
    wts = jnp.stack([(1 - du) * (1 - dv), du * (1 - dv),
                     (1 - du) * dv, du * dv], axis=1)             # [B,4,D,P]
    valid = ((cx >= 0) & (cx <= W - 1) & (cy >= 0) & (cy <= H - 1))
    ix = jnp.clip(cx, 0, W - 1).astype(jnp.int32)
    iy = jnp.clip(cy, 0, H - 1).astype(jnp.int32)
    idx = iy * W + ix                                             # [B,4,D,P]
    wts = wts * valid                                             # zeros padding for OOB
    gathered = jax.vmap(lambda f, i: jnp.take(f, i, axis=1))(feat_cf, idx)  # [B,F,4,D,P]
    out = jnp.einsum('bfcdp,bcdp->bdfp', gathered, wts)           # [B,D,F,P] f32
    return out.astype(out_dtype)


def warp_src_features_cf(src_feat_cf, ref_cam, src_cam, d_vals, H, W, out_dtype):
    # src_feat_cf: [B, F, HW]; *_cam: [B, 2, 4, 4]; d_vals: [B, D] -> [B, D, F, HW]
    B, F, HW = src_feat_cf.shape
    K_ref = ref_cam[:, 1, :3, :3]
    K_src = src_cam[:, 1, :3, :3]
    E_ref = ref_cam[:, 0]
    E_src = src_cam[:, 0]

    ys, xs = jnp.meshgrid(jnp.arange(H, dtype=jnp.float32),
                          jnp.arange(W, dtype=jnp.float32), indexing='ij')
    pix = jnp.stack([xs, ys, jnp.ones_like(xs)], axis=0).reshape(3, HW)       # [3, P]

    cam_dirs = jnp.einsum('bij,jp->bip', jnp.linalg.inv(K_ref), pix)          # [B,3,P]
    pts_ref = cam_dirs[:, None, :, :] * d_vals[:, :, None, None]              # [B,D,3,P]

    R_ref, t_ref = E_ref[:, :3, :3], E_ref[:, :3, 3]
    R_src, t_src = E_src[:, :3, :3], E_src[:, :3, 3]
    pts_world = jnp.einsum('bij,bdjp->bdip', jnp.linalg.inv(R_ref),
                           pts_ref - t_ref[:, None, :, None])
    pts_src = jnp.einsum('bij,bdjp->bdip', R_src, pts_world) + t_src[:, None, :, None]
    proj = jnp.einsum('bij,bdjp->bdip', K_src, pts_src)                       # [B,D,3,P]

    z = proj[:, :, 2, :]
    z = jnp.where(jnp.abs(z) < 1e-6, 1e-6, z)
    u = proj[:, :, 0, :] / z
    v = proj[:, :, 1, :] / z
    return _bilinear_sample_cf(src_feat_cf, u, v, H, W, out_dtype)


# ----------------------------------------------------------------------------
# Full forward (mirrors VisMvsnetWrapped.forward semantics)
# ----------------------------------------------------------------------------
def vis_mvsnet_forward(images, cams, keyview_idx, params, num_depth=16):
    # images: [V, B, 3, H, W] (already normalized); cams: [V, B, 2, 4, 4]
    V, B, C, H, W = images.shape
    HW = H * W
    src_idx = [i for i in range(V) if i != keyview_idx]

    ref_cam = cams[keyview_idx]                       # [B,2,4,4]
    src_cams = cams[jnp.array(src_idx)]               # [Vs,B,2,4,4]
    vol_dtype = _volume_dtype()

    # ---- fused feature extraction for ALL V*B views in one Pallas call ----
    x_all = images.reshape(V * B, C, HW)
    feats = conv3x3_cf_pallas(x_all, params['w_feat'], params['b_feat'],
                              H=H, W=W, relu=True)    # [V*B, F, HW] f32
    Fc = feats.shape[1]
    feats = feats.reshape(V, B, Fc, HW)
    ref_feat = feats[keyview_idx]                     # [B, F, HW]
    src_feats = feats[jnp.array(src_idx)]             # [Vs, B, F, HW]

    # ---- per-batch-element depth hypotheses from the reference cam ----
    min_d = ref_cam[:, 1, 3, 0]
    step = ref_cam[:, 1, 3, 1]
    d_vals = min_d[:, None] + step[:, None] * jnp.arange(num_depth, dtype=jnp.float32)

    # ---- plane-sweep homography warping (single [Vs,B,D,F,HW] materialization) ----
    def _warp_view(sf, sc):
        return warp_src_features_cf(sf, ref_cam, sc, d_vals, H, W, vol_dtype)
    warp_vol = jax.vmap(_warp_view)(src_feats, src_cams)          # [Vs, B, D, F, HW]

    # ---- fused cost volume + online softmax + soft-argmin (Pallas kernel) ----
    depth_flat, unc_flat = cost_softargmin_pallas(
        ref_feat, warp_vol, d_vals[..., None],
        params['w_scale'], params['w_bias'])                      # [B,1,HW] each

    # ---- refinement head (same Pallas conv kernel, C_in=4, C_out=1, batch folded) ----
    ref_img_cf = images[keyview_idx].reshape(B, C, HW)
    refine_in = jnp.concatenate([ref_img_cf, depth_flat], axis=1)     # [B, 4, HW]
    residual = conv3x3_cf_pallas(refine_in, params['w_refine'], params['b_refine'],
                                 H=H, W=W, relu=False)                # [B, 1, HW]
    refined = depth_flat + residual

    pred = {'depth': refined.reshape(B, 1, H, W),
            'depth_uncertainty': unc_flat.reshape(B, 1, H, W)}
    aux = {}
    return pred, aux


# ----------------------------------------------------------------------------
# Main
# ----------------------------------------------------------------------------
if __name__ == "__main__":
    key = jax.random.PRNGKey(0)
    B, V, C, H, W = 2, 3, 3, 16, 16      # 1 key view + 2 source views
    Fc = 16                              # feature channels
    D = 16                               # depth hypotheses (single cascade stage)
    keyview_idx = 0

    k_img, k_wf, k_bf, k_ws, k_wb, k_wr = jax.random.split(key, 6)
    images = jax.random.normal(k_img, (V, B, C, H, W), dtype=jnp.float32)

    # cams: cam[0] = pose (world->cam), cam[1][:3,:3] = K,
    #       cam[1][3] = [min_depth, step, num_steps, max_depth]
    intrin = jnp.array([[20.0, 0.0, W / 2.0],
                        [0.0, 20.0, H / 2.0],
                        [0.0, 0.0, 1.0]], dtype=jnp.float32)

    def make_pose(tx):
        return jnp.eye(4, dtype=jnp.float32).at[0, 3].set(tx)

    poses = jnp.stack([make_pose(0.0), make_pose(0.5), make_pose(-0.5)])   # [V,4,4]

    min_depth, max_depth = 2.0, 10.0
    step_size = (max_depth - min_depth) / D
    cams = jnp.zeros((V, B, 2, 4, 4), dtype=jnp.float32)
    cams = cams.at[:, :, 0].set(poses[:, None])
    cams = cams.at[:, :, 1, :3, :3].set(intrin)
    cams = cams.at[:, :, 1, 3, 0].set(min_depth)
    cams = cams.at[:, :, 1, 3, 1].set(step_size)
    cams = cams.at[:, :, 1, 3, 2].set(float(D))
    cams = cams.at[:, :, 1, 3, 3].set(max_depth)

    params = {
        'w_feat': 0.1 * jax.random.normal(k_wf, (Fc, 9 * C), dtype=jnp.float32),
        'b_feat': 0.1 * jax.random.normal(k_bf, (Fc, 1), dtype=jnp.float32),
        'w_scale': 1.0 + 0.05 * jax.random.normal(k_ws, (D, 1), dtype=jnp.float32),
        'w_bias': 0.05 * jax.random.normal(k_wb, (D, 1), dtype=jnp.float32),
        'w_refine': 0.01 * jax.random.normal(k_wr, (1, 9 * 4), dtype=jnp.float32),
        'b_refine': jnp.zeros((1, 1), dtype=jnp.float32),
    }

    pred, aux = vis_mvsnet_forward(images, cams, keyview_idx, params, num_depth=D)
    jax.block_until_ready(pred['depth'])
    jax.block_until_ready(pred['depth_uncertainty'])

    assert pred['depth'].shape == (B, 1, H, W)
    assert pred['depth_uncertainty'].shape == (B, 1, H, W)
    assert bool(jnp.all(jnp.isfinite(pred['depth'])))
    assert bool(jnp.all(jnp.isfinite(pred['depth_uncertainty'])))
    assert bool(jnp.all((pred['depth_uncertainty'] >= 0.0)
                        & (pred['depth_uncertainty'] <= 1.0)))
    print("KERNEL_OK")
</pallas_src>

<mosaic_0001>
module attributes {stable_mosaic.version = 11 : i64} {
  func.func @_conv3x3_kernel(%arg0: i32, %arg1: memref<3x1536xf32, #tpu.memory_space<vmem>>, %arg2: memref<16x27xf32, #tpu.memory_space<vmem>>, %arg3: memref<16x1xf32, #tpu.memory_space<vmem>>, %arg4: memref<27x1536xf32, #tpu.memory_space<vmem>>, %arg5: memref<16x1536xf32, #tpu.memory_space<vmem>>) attributes {dimension_semantics = [#tpu.dimension_semantics<parallel>], iteration_bounds = array<i64: 1>, scalar_prefetch = 0 : i64, scratch_operands = 0 : i64, tpu.core_type = #tpu.core_type<tc>, window_params = [{transform_indices = @transform_0, window_bounds = array<i64: 3, 1536>}, {pipeline_mode = #tpu.pipeline_mode<synchronous>, transform_indices = @transform_1, window_bounds = array<i64: 16, 27>}, {pipeline_mode = #tpu.pipeline_mode<synchronous>, transform_indices = @transform_2, window_bounds = array<i64: 16, 1>}, {pipeline_mode = #tpu.pipeline_mode<synchronous>, transform_indices = @transform_3, window_bounds = array<i64: 27, 1536>}, {transform_indices = @transform_4, window_bounds = array<i64: 16, 1536>}]} {
    %c0 = arith.constant 0 : index
    %c0_0 = arith.constant 0 : index
    %0 = vector.load %arg1[%c0, %c0_0] : memref<3x1536xf32, #tpu.memory_space<vmem>>, vector<3x1536xf32>
    %c17_i32 = arith.constant 17 : i32
    %1 = tpu.dynamic_rotate %0 by %c17_i32 dim 1 : vector<3x1536xf32>, i32 -> vector<3x1536xf32>
    %c16_i32 = arith.constant 16 : i32
    %2 = tpu.dynamic_rotate %0 by %c16_i32 dim 1 : vector<3x1536xf32>, i32 -> vector<3x1536xf32>
    %c15_i32 = arith.constant 15 : i32
    %3 = tpu.dynamic_rotate %0 by %c15_i32 dim 1 : vector<3x1536xf32>, i32 -> vector<3x1536xf32>
    %c1_i32 = arith.constant 1 : i32
    %4 = tpu.dynamic_rotate %0 by %c1_i32 dim 1 : vector<3x1536xf32>, i32 -> vector<3x1536xf32>
    %c1535_i32 = arith.constant 1535 : i32
    %5 = tpu.dynamic_rotate %0 by %c1535_i32 dim 1 : vector<3x1536xf32>, i32 -> vector<3x1536xf32>
    %c1521_i32 = arith.constant 1521 : i32
    %6 = tpu.dynamic_rotate %0 by %c1521_i32 dim 1 : vector<3x1536xf32>, i32 -> vector<3x1536xf32>
    %c1520_i32 = arith.constant 1520 : i32
    %7 = tpu.dynamic_rotate %0 by %c1520_i32 dim 1 : vector<3x1536xf32>, i32 -> vector<3x1536xf32>
    %c1519_i32 = arith.constant 1519 : i32
    %8 = tpu.dynamic_rotate %0 by %c1519_i32 dim 1 : vector<3x1536xf32>, i32 -> vector<3x1536xf32>
    %9 = tpu.concatenate %1, %2, %3, %4, %0, %5, %6, %7, %8 in 0 : vector<3x1536xf32>, vector<3x1536xf32>, vector<3x1536xf32>, vector<3x1536xf32>, vector<3x1536xf32>, vector<3x1536xf32>, vector<3x1536xf32>, vector<3x1536xf32>, vector<3x1536xf32> -> vector<27x1536xf32>
    %c0_1 = arith.constant 0 : index
    %c0_2 = arith.constant 0 : index
    %10 = vector.load %arg4[%c0_1, %c0_2] : memref<27x1536xf32, #tpu.memory_space<vmem>>, vector<27x1536xf32>
    %11 = arith.mulf %9, %10 : vector<27x1536xf32>
    %c0_3 = arith.constant 0 : index
    %c0_4 = arith.constant 0 : index
    %12 = vector.load %arg2[%c0_3, %c0_4] : memref<16x27xf32, #tpu.memory_space<vmem>>, vector<16x27xf32>
    %cst = arith.constant dense<0.000000e+00> : vector<16x1536xf32>
    %13 = tpu.matmul %12, %11, %cst {dimension_numbers = #tpu.dot_dimension_numbers<[1], [0], [0], [1], [0, 0, 1, 1], [], []>} : vector<16x27xf32>, vector<27x1536xf32>, vector<16x1536xf32> -> vector<16x1536xf32>
    %c0_5 = arith.constant 0 : index
    %c0_6 = arith.constant 0 : index
    %14 = vector.load %arg3[%c0_5, %c0_6] : memref<16x1xf32, #tpu.memory_space<vmem>>, vector<16x1xf32>
    %15 = vector.broadcast %14 : vector<16x1xf32> to vector<16x1536xf32>
    %16 = arith.addf %13, %15 : vector<16x1536xf32>
    %cst_7 = arith.constant 0.000000e+00 : f32
    %17 = vector.broadcast %cst_7 : f32 to vector<16x1536xf32>
    %18 = arith.maximumf %16, %17 : vector<16x1536xf32>
    %c0_8 = arith.constant 0 : index
    %c0_9 = arith.constant 0 : index
    %19 = vector.load %arg5[%c0_8, %c0_9] : memref<16x1536xf32, #tpu.memory_space<vmem>>, vector<16x1536xf32>
    tpu.vector_store %arg5[%c0_8, %c0_9], %18 {strides = array<i32>} : memref<16x1536xf32, #tpu.memory_space<vmem>>, vector<16x1536xf32>,
    return
  }
  func.func @transform_0(%arg0: i32) -> (i32, i32) {
    %c0_i32 = arith.constant 0 : i32
    %c0_i32_0 = arith.constant 0 : i32
    return %c0_i32, %arg0 : i32, i32
  }
  func.func @transform_1(%arg0: i32) -> (i32, i32) {
    %c0_i32 = arith.constant 0 : i32
    %c0_i32_0 = arith.constant 0 : i32
    %c0_i32_1 = arith.constant 0 : i32
    return %c0_i32, %c0_i32_0 : i32, i32
  }
  func.func @transform_2(%arg0: i32) -> (i32, i32) {
    %c0_i32 = arith.constant 0 : i32
    %c0_i32_0 = arith.constant 0 : i32
    %c0_i32_1 = arith.constant 0 : i32
    return %c0_i32, %c0_i32_0 : i32, i32
  }
  func.func @transform_3(%arg0: i32) -> (i32, i32) {
    %c0_i32 = arith.constant 0 : i32
    %c0_i32_0 = arith.constant 0 : i32
    %c0_i32_1 = arith.constant 0 : i32
    return %c0_i32, %c0_i32_0 : i32, i32
  }
  func.func @transform_4(%arg0: i32) -> (i32, i32) {
    %c0_i32 = arith.constant 0 : i32
    %c0_i32_0 = arith.constant 0 : i32
    return %c0_i32, %arg0 : i32, i32
  }
}

</mosaic_0001>

<bundles_post_ra>
// kernel: tpu_custom_call.1
= control target key start
LH: loop header
LB: loop body
LE: loop exit
PB: predicated region body
PF: predicated region fallthrough
CT: control target
= control target key end

     0   :  { %9 = vsyncpa [#allocation3], 0  ;;  %s2581_s0 = inlined_call_operand.hbm [shape: f32[3,1536], index: 0, kind: input, shape index: {}]   ;;  %s2582_s1 = inlined_call_operand.vmem [shape: f32[16,27], index: 1, kind: input, shape index: {}]   ;;  %s2583_s2 = inlined_call_operand.vmem [shape: f32[16,1], index: 2, kind: input, shape index: {}]   ;;  %s2584_s3 = inlined_call_operand.hbm [shape: f32[27,1536], index: 3, kind: input, shape index: {}]   ;;  %s2585_s4 = inlined_call_operand.hbm [shape: f32[16,1536], index: 4, kind: output, shape index: {}]  }
   0x1   :  { %10 = vsyncpa [#allocation6], 0 }
   0x2   :  { %11 = vsyncpa [#allocation4], 0  ;;  %s1553_s15 = smov [#allocation2]   ;;  %s1554_s17 = smov [#allocation5]  }
   0x3   :  { %s18_s16 = sshll.u32 %s1553_s15, 4  ;;  %s31_s18 = sshll.u32 %s1554_s17, 4  ;;  %s19_s16 = int_to_ptr.vmem [resolvable:$true] %s18_s16  ;;  %s1594_s18 = int_to_ptr.vmem [resolvable:$true] %s31_s18 }
   0x4   :  { %s1481_s21 = scalar_lea.hbm %s2581_s0, 768 }
   0x5   :  { %p1482_p0 = scmp.ne.s32.totalorder %s2581_s0, %s1481_s21  ;;  %p1485_p1 = scmp.lt.u32.totalorder %s1481_s21, %s2581_s0 }
   0x7   :  { %p1487_p2 = pnand %p1485_p1, %p1482_p0 }
   0x9   :  { %1490 = shalt.err (!%p1487_p2)
}
   0xa   :  { %s1491_s26 = scalar_lea.vmem %s19_s16, 768  ;;  %p1496_p4 = scmp.lt.s32.totalorder %s19_s16, %s19_s16 }
   0xb   :  { %p1492_p3 = scmp.ne.s32.totalorder %s19_s16, %s1491_s26  ;;  %p1497_p5 = scmp.lt.s32.totalorder %s1491_s26, %s1491_s26 }
   0xd   :  { %p1498_p6 = por %p1497_p5, %p1496_p4 }
   0xf   :  { %p1499_p7 = pnand %p1498_p6, %p1492_p3 }
  0x11   :  { %1502 = shalt.err (!%p1499_p7)
}
  0x12   :  { %21 = dma.hbm_to_vmem [thread:$0]  %s2581_s0, 768, %s19_s16, [#allocation3]  }
  0x13   :  { %s1503_s5 = scalar_lea.hbm %s2584_s3, 6144 }
  0x14   :  { %p1504_p8 = scmp.ne.s32.totalorder %s2584_s3, %s1503_s5  ;;  %p1507_p9 = scmp.lt.u32.totalorder %s1503_s5, %s2584_s3 }
  0x16   :  { %p1509_p10 = pnand %p1507_p9, %p1504_p8 }
  0x18   :  { %1512 = shalt.err (!%p1509_p10)
}
  0x19   :  { %s1513_s10 = scalar_lea.vmem %s1594_s18, 6144  ;;  %p1518_p12 = scmp.lt.s32.totalorder %s1594_s18, %s1594_s18 }
  0x1a   :  { %p1514_p11 = scmp.ne.s32.totalorder %s1594_s18, %s1513_s10  ;;  %p1519_p13 = scmp.lt.s32.totalorder %s1513_s10, %s1513_s10 }
  0x1c   :  { %p1520_p0 = por %p1519_p13, %p1518_p12 }
  0x1e   :  { %p1521_p1 = pnand %p1520_p0, %p1514_p11 }
  0x20   :  { %1524 = shalt.err (!%p1521_p1)
}
  0x21   :  { %s1555_s0 = smov 1536   ;;  %s1556_s11 = smov 96  }
  0x22   :  { %37 = dma.hbm_to_vmem [thread:$0]  %s2584_s3, 6144, %s1594_s18, [#allocation6], %s1555_s0, %s1555_s0, %s1556_s11  }
  0x23   :  { %1547 = dma.done.wait [#allocation3], 768  }
  0x24   :  { %1548 = vsyncadd [#allocation3], 4294966528 }
  0x25   :  { %1549 = dma.done.wait [#allocation6], 6144  }
  0x26   :  { %1550 = vsyncadd [#allocation6], 4294961152  ;;  %v1628_v0 = vld [vmem:[#allocation2 + $0x8] sm:$0x77]  ;;  %v1630_v1 = vld [vmem:[#allocation2] sm:$0x77]  ;;  %v92_v23 = vlaneseq }
  0x27   :  { %s1557_s14 = smov 15   ;;  %v57_v2 = vcombine.high %v1628_v0, %v1628_v0  ;;  %s1558_s3 = smov 1   ;;  %v56_v3 = vcombine.high %v1630_v1, %v1630_v1  ;;  %v1651_v4 = vld [vmem:[#allocation2 + $0x28] sm:$0x77]  ;;  %v1670_v6 = vld [vmem:[#allocation2 + $0x10] sm:$0x77]  ;;  %v475_v42 = vcombine.low %v1628_v0, %v1628_v0 }
  0x28   :  { %148 = vrot.lane.b32.xlu1 %v1628_v0, %s1557_s14  ;;  %144 = vrot.lane.b32.xlu0 %v1630_v1, %s1557_s14  ;;  %s1559_s15 = smov 16   ;;  %v1658_v5 = vcombine.high %v1651_v4, %v1651_v4  ;;  %s1560_s16 = smov 127   ;;  %v1704_v7 = vcombine.high %v1670_v6, %v1670_v6  ;;  %v1706_v8 = vld [vmem:[#allocation2 + $0x18] sm:$0x77]  ;;  %v1746_v10 = vld [vmem:[#allocation2 + $0x20] sm:$0x77] }
  0x29   :  { %s1561_s17 = smov 17   ;;  %s1562_s18 = smov 113   ;;  %v1714_v9 = vcombine.high %v1706_v8, %v1706_v8  ;;  %v1565_v11 = vmov 0.0   ;;  %v1788_v22 = vcombine.high %v1746_v10, %v1746_v10  ;;  %v1796_v26 = vand.u32 127, %v92_v23 }
  0x2a   :  { %s1563_s19 = smov 112   ;;  %s1564_s20 = smov 111   ;;  %902 = vmatprep.mubr.f32.mxu0 %v1565_v11  ;;  %979 = vmatprep.mubr.f32.mxu1 %v1565_v11  ;;  %vm620_vm3 = vcmask 1040384   ;;  %vm633_vm5 = vcmask 1043456   ;;  %vm646_vm6 = vcmask 1046528   ;;  %vm2587_vm8 = vcmask 1042432  }
  0x2b   :  { %vm205_vm0 = vcmp.lt.s32.totalorder %v1796_v26, 1  ;;  %vm168_vm1 = vcmp.lt.s32.totalorder %v1796_v26, 15  ;;  %vm242_vm2 = vcmp.lt.s32.totalorder %v1796_v26, 127  ;;  %vm131_vm4 = vcmp.lt.s32.totalorder %v1796_v26, 16 }
  0x2c   :  { %150 = vrot.lane.b32.xlu1 %v57_v2, %s1557_s14  ;;  %181 = vrot.lane.b32.xlu0 %v1630_v1, %s1558_s3  ;;  %vm2589_vm7 = vcmp.lt.s32.totalorder %v1796_v26, 17  ;;  %vm2588_vm9 = vcmask 1045504   ;;  %vm2586_vm10 = vcmp.lt.s32.totalorder %v1796_v26, 113  ;;  %vm316_vm11 = vcmp.lt.s32.totalorder %v1796_v26, 112 }
  0x2d   :  { %vm659_vm12 = vcmask 1041408   ;;  %vm672_vm13 = vcmask 1044480   ;;  %vm353_vm14 = vcmp.lt.s32.totalorder %v1796_v26, 111  ;;  %vm1567_vm15 = vmmov 1  }
  0x30   :  { %183 = vrot.lane.b32.xlu1 %v56_v3, %s1558_s3  ;;  %146 = vrot.lane.b32.xlu0 %v56_v3, %s1557_s14 }
  0x34   :  { %187 = vrot.lane.b32.xlu1 %v57_v2, %s1558_s3  ;;  %185 = vrot.lane.b32.xlu0 %v1628_v0, %s1558_s3 }
  0x38   :  { %109 = vrot.lane.b32.xlu1 %v56_v3, %s1559_s15  ;;  %107 = vrot.lane.b32.xlu0 %v1630_v1, %s1559_s15 }
  0x3c   :  { %113 = vrot.lane.b32.xlu1 %v57_v2, %s1559_s15  ;;  %111 = vrot.lane.b32.xlu0 %v1628_v0, %s1559_s15 }
  0x40   :  { %203 = vrot.lane.b32.xlu1 %v1658_v5, %s1558_s3  ;;  %166 = vrot.lane.b32.xlu0 %v1658_v5, %s1557_s14 }
  0x44   :  { %220 = vrot.lane.b32.xlu1 %v56_v3, %s1560_s16  ;;  %129 = vrot.lane.b32.xlu0 %v1658_v5, %s1559_s15 }
  0x48   :  { %224 = vrot.lane.b32.xlu1 %v57_v2, %s1560_s16  ;;  %222 = vrot.lane.b32.xlu0 %v1628_v0, %s1560_s16 }
  0x4c   :  { %68 = vrot.lane.b32.xlu1 %v1630_v1, %s1561_s17  ;;  %226 = vrot.lane.b32.xlu0 %v1670_v6, %s1560_s16 }
  0x50   :  { %72 = vrot.lane.b32.xlu1 %v1628_v0, %s1561_s17  ;;  %70 = vrot.lane.b32.xlu0 %v56_v3, %s1561_s17 }
  0x54   :  { %218 = vrot.lane.b32.xlu1 %v1630_v1, %s1560_s16  ;;  %74 = vrot.lane.b32.xlu0 %v57_v2, %s1561_s17 }
  0x58   :  { %257 = vrot.lane.b32.xlu1 %v56_v3, %s1562_s18  ;;  %90 = vrot.lane.b32.xlu0 %v1658_v5, %s1561_s17 }
  0x5c   :  { %261 = vrot.lane.b32.xlu1 %v57_v2, %s1562_s18  ;;  %259 = vrot.lane.b32.xlu0 %v1628_v0, %s1562_s18 }
  0x60   :  { %255 = vrot.lane.b32.xlu1 %v1630_v1, %s1562_s18  ;;  %263 = vrot.lane.b32.xlu0 %v1670_v6, %s1562_s18 }
  0x64   :  { %296 = vrot.lane.b32.xlu1 %v1628_v0, %s1563_s19  ;;  %294 = vrot.lane.b32.xlu0 %v56_v3, %s1563_s19 }
  0x68   :  { %300 = vrot.lane.b32.xlu1 %v1670_v6, %s1563_s19  ;;  %298 = vrot.lane.b32.xlu0 %v57_v2, %s1563_s19 }
  0x6c   :  { %152 = vrot.lane.b32.xlu1 %v1670_v6, %s1557_s14  ;;  %292 = vrot.lane.b32.xlu0 %v1630_v1, %s1563_s19 }
  0x70   :  { %156 = vrot.lane.b32.xlu1 %v1706_v8, %s1557_s14  ;;  %154 = vrot.lane.b32.xlu0 %v1704_v7, %s1557_s14 }
  0x74   :  { %189 = vrot.lane.b32.xlu1 %v1670_v6, %s1558_s3  ;;  %158 = vrot.lane.b32.xlu0 %v1714_v9, %s1557_s14 }
  0x78   :  { %193 = vrot.lane.b32.xlu1 %v1706_v8, %s1558_s3  ;;  %191 = vrot.lane.b32.xlu0 %v1704_v7, %s1558_s3 }
  0x7c   :  { %115 = vrot.lane.b32.xlu1 %v1670_v6, %s1559_s15  ;;  %195 = vrot.lane.b32.xlu0 %v1714_v9, %s1558_s3 }
  0x80   :  { %119 = vrot.lane.b32.xlu1 %v1706_v8, %s1559_s15  ;;  %117 = vrot.lane.b32.xlu0 %v1704_v7, %s1559_s15 }
  0x84   :  { %331 = vrot.lane.b32.xlu1 %v56_v3, %s1564_s20  ;;  %121 = vrot.lane.b32.xlu0 %v1714_v9, %s1559_s15 }
  0x88   :  { %335 = vrot.lane.b32.xlu1 %v57_v2, %s1564_s20  ;;  %333 = vrot.lane.b32.xlu0 %v1628_v0, %s1564_s20 }
  0x8c   :  { %228 = vrot.lane.b32.xlu1 %v1704_v7, %s1560_s16  ;;  %337 = vrot.lane.b32.xlu0 %v1670_v6, %s1564_s20 }
  0x90   :  { %232 = vrot.lane.b32.xlu1 %v1714_v9, %s1560_s16  ;;  %230 = vrot.lane.b32.xlu0 %v1706_v8, %s1560_s16 }
  0x94   :  { %329 = vrot.lane.b32.xlu1 %v1630_v1, %s1564_s20  ;;  %234 = vrot.lane.b32.xlu0 %v1746_v10, %s1560_s16 }
  0x98   :  { %78 = vrot.lane.b32.xlu1 %v1704_v7, %s1561_s17  ;;  %76 = vrot.lane.b32.xlu0 %v1670_v6, %s1561_s17 }
  0x9a   :  { %v149_v12 = vpop.permute.xlu1 %148  ;;  %v1758_v13 = vpop.permute.xlu0 %144 }
  0x9c   :  { %82 = vrot.lane.b32.xlu1 %v1714_v9, %s1561_s17  ;;  %80 = vrot.lane.b32.xlu0 %v1706_v8, %s1561_s17 }
  0x9e   :  { %v1764_v14 = vpop.permute.xlu1 %150  ;;  %v182_v15 = vpop.permute.xlu0 %181 }
  0x9f   :  { %v1833_v39 = vsel %vm168_vm1, %v149_v12, %v1764_v14 }
  0xa0   :  { %267 = vrot.lane.b32.xlu1 %v1706_v8, %s1562_s18  ;;  %265 = vrot.lane.b32.xlu0 %v1704_v7, %s1562_s18  ;;  %v417_v46 = vrot.slane %v1833_v39, 2 }
  0xa2   :  { %v184_v16 = vpop.permute.xlu1 %183  ;;  %v147_v17 = vpop.permute.xlu0 %146 }
  0xa3   :  { %v216_v29 = vsel %vm205_vm0, %v182_v15, %v184_v16  ;;  %v1813_v30 = vsel %vm168_vm1, %v1758_v13, %v147_v17  ;;  %v178_v40 = vsel %vm168_vm1, %v147_v17, %v149_v12  ;;  %v686_v17 = vld [vmem:[#allocation5 + $0x8] sm:$0xff] }
  0xa4   :  { %271 = vrot.lane.b32.xlu1 %v1746_v10, %s1562_s18  ;;  %269 = vrot.lane.b32.xlu0 %v1714_v9, %s1562_s18  ;;  %v451_v33 = vrot.slane %v216_v29, 7  ;;  %v415_v34 = vrot.slane %v1813_v30, 2  ;;  %v416_v47 = vrot.slane %v178_v40, 2  ;;  %v474_v29 = vcombine.low %v1630_v1, %v1630_v1 }
  0xa6   :  { %v1774_v18 = vpop.permute.xlu1 %187  ;;  %v186_v19 = vpop.permute.xlu0 %185  ;;  %v622_v43 = vsel %vm620_vm3, %v415_v34, %v451_v33 }
  0xa7   :  { %v214_v35 = vsel %vm205_vm0, %v186_v19, %v1774_v18  ;;  %v215_v36 = vsel %vm205_vm0, %v184_v16, %v186_v19  ;;  %v635_v56 = vsel %vm633_vm5, %v622_v43, %v1630_v1  ;;  %v698_v19 = vld [vmem:[#allocation5 + $0x68] sm:$0xff] }
  0xa8   :  { %304 = vrot.lane.b32.xlu1 %v1706_v8, %s1563_s19  ;;  %302 = vrot.lane.b32.xlu0 %v1704_v7, %s1563_s19  ;;  %v452_v44 = vrot.slane %v215_v36, 7  ;;  %v453_v45 = vrot.slane %v214_v35, 7 }
  0xaa   :  { %v110_v20 = vpop.permute.xlu1 %109  ;;  %v1780_v21 = vpop.permute.xlu0 %107  ;;  %v623_v57 = vsel %vm620_vm3, %v416_v47, %v452_v44  ;;  %v624_v58 = vsel %vm620_vm3, %v417_v46, %v453_v45  ;;  %v687_v45 = vld [vmem:[#allocation5 + $0x10] sm:$0xff] }
  0xab   :  { %v142_v48 = vsel %vm131_vm4, %v1780_v21, %v110_v20  ;;  %v637_v35 = vsel %vm633_vm5, %v624_v58, %v1628_v0  ;;  %v636_v36 = vsel %vm633_vm5, %v623_v57, %v475_v42 }
  0xac   :  { %308 = vrot.lane.b32.xlu1 %v1746_v10, %s1563_s19  ;;  %306 = vrot.lane.b32.xlu0 %v1714_v9, %s1563_s19  ;;  %v379_v59 = vrot.slane %v142_v48, 5  ;;  %v700_v48 = vld [vmem:[#allocation5 + $0x78] sm:$0xff] }
  0xae   :  { %v1790_v24 = vpop.permute.xlu1 %113  ;;  %v112_v25 = vpop.permute.xlu0 %111 }
  0xaf   :  { %v141_v51 = vsel %vm131_vm4, %v110_v20, %v112_v25  ;;  %v140_v61 = vsel %vm131_vm4, %v112_v25, %v1790_v24 }
  0xb0   :  { %162 = vrot.lane.b32.xlu1 %v1788_v22, %s1557_s14  ;;  %160 = vrot.lane.b32.xlu0 %v1746_v10, %s1557_s14  ;;  %v380_v62 = vrot.slane %v141_v51, 5  ;;  %v381_v30 = vrot.slane %v140_v61, 5 }
  0xb2   :  { %v1798_v27 = vpop.permute.xlu1 %203  ;;  %v1800_v28 = vpop.permute.xlu0 %166 }
  0xb3   :  { %v217_v52 = vsel %vm205_vm0, %v1798_v27, %v182_v15  ;;  %v1868_v53 = vsel %vm168_vm1, %v1800_v28, %v1758_v13 }
  0xb4   :  { %197 = vrot.lane.b32.xlu1 %v1746_v10, %s1558_s3  ;;  %164 = vrot.lane.b32.xlu0 %v1651_v4, %s1557_s14  ;;  %v450_v63 = vrot.slane %v217_v52, 7  ;;  %v414_v2 = vrot.slane %v1868_v53, 2  ;;  %v699_v53 = vld [vmem:[#allocation5 + $0x70] sm:$0xff] }
  0xb6   :  { %v1815_v31 = vpop.permute.xlu1 %220  ;;  %v1817_v32 = vpop.permute.xlu0 %129 }
  0xb7   :  { %v143_v1 = vsel %vm131_vm4, %v1817_v32, %v1780_v21 }
  0xb8   :  { %201 = vrot.lane.b32.xlu1 %v1651_v4, %s1558_s3  ;;  %199 = vrot.lane.b32.xlu0 %v1788_v22, %s1558_s3  ;;  %v378_v58 = vrot.slane %v143_v1, 5 }
  0xba   :  { %v225_v37 = vpop.permute.xlu1 %224  ;;  %v223_v38 = vpop.permute.xlu0 %222 }
  0xbb   :  { %v1841_v41 = vsel %vm242_vm2, %v1815_v31, %v223_v38  ;;  %v1888_v60 = vsel %vm242_vm2, %v223_v38, %v225_v37 }
  0xbc   :  { %125 = vrot.lane.b32.xlu1 %v1788_v22, %s1559_s15  ;;  %123 = vrot.lane.b32.xlu0 %v1746_v10, %s1559_s15  ;;  %v499_v54 = vrot.slane %v1841_v41, 1  ;;  %v500_v20 = vrot.slane %v1888_v60, 1 }
  0xbe   :  { %v1854_v49 = vpop.permute.xlu1 %68  ;;  %v1856_v50 = vpop.permute.xlu0 %226  ;;  %v648_v16 = vsel %vm646_vm6, %v635_v56, %v499_v54  ;;  %v649_v52 = vsel %vm646_vm6, %v636_v36, %v500_v20 }
  0xbf   :  { %v1874_v55 = vsel %vm242_vm2, %v225_v37, %v1856_v50  ;;  %v621_v37 = vsel %vm620_vm3, %v414_v2, %v450_v63  ;;  %v746_v43 = vmul.f32 %v698_v19, %v648_v16 }
  0xc0   :  { %339 = vrot.lane.b32.xlu1 %v1704_v7, %s1564_s20  ;;  %127 = vrot.lane.b32.xlu0 %v1651_v4, %s1559_s15  ;;  %v501_v12 = vrot.slane %v1874_v55, 1 }
  0xc2   :  { %v73_v3 = vpop.permute.xlu1 %72  ;;  %v71_v7 = vpop.permute.xlu0 %70  ;;  %v650_v42 = vsel %vm646_vm6, %v637_v35, %v501_v12 }
  0xc3   :  { %v104_v13 = vsel %vm2589_vm7, %v71_v7, %v73_v3  ;;  %v105_v15 = vsel %vm2589_vm7, %v1854_v49, %v71_v7  ;;  %v748_v63 = vmul.f32 %v700_v48, %v650_v42 }
  0xc4   :  { %v596_v23 = vsel %vm2587_vm8, %v105_v15, %v379_v59  ;;  %v597_v25 = vsel %vm2587_vm8, %v104_v13, %v380_v62  ;;  %343 = vrot.lane.b32.xlu1 %v1714_v9, %s1564_s20  ;;  %341 = vrot.lane.b32.xlu0 %v1706_v8, %s1564_s20  ;;  %v747_v13 = vmul.f32 %v699_v53, %v649_v52  ;;  %v697_v15 = vld [vmem:[#allocation5 + $0x60] sm:$0xff] }
  0xc5   :  { %v609_v33 = vsel %vm2588_vm9, %v596_v23, %v415_v34  ;;  %v610_v44 = vsel %vm2588_vm9, %v597_v25, %v416_v47  ;;  %v688_v47 = vld [vmem:[#allocation5 + $0x18] sm:$0xff] }
  0xc6   :  { %v1917_v38 = vpop.permute.xlu1 %218  ;;  %v1919_v40 = vpop.permute.xlu0 %74  ;;  %v734_v9 = vmul.f32 %v686_v17, %v609_v33  ;;  %v735_v57 = vmul.f32 %v687_v45, %v610_v44 }
  0xc7   :  { %v1930_v0 = vsel %vm242_vm2, %v1917_v38, %v1815_v31  ;;  %v103_v34 = vsel %vm2589_vm7, %v73_v3, %v1919_v40  ;;  %v634_v3 = vsel %vm633_vm5, %v621_v37, %v474_v29 }
  0xc8   :  { %v498_v51 = vrot.slane %v1930_v0, 1  ;;  %v598_v21 = vsel %vm2587_vm8, %v103_v34, %v381_v30  ;;  %236 = vrot.lane.b32.xlu1 %v1788_v22, %s1560_s16  ;;  %345 = vrot.lane.b32.xlu0 %v1746_v10, %s1564_s20  ;;  %v1390_v31 = vpack.c.bf16 %v746_v43, %v734_v9  ;;  %v1402_v19 = vpack.c.bf16 %v747_v13, %v735_v57  ;;  %v709_v0 = vld [vmem:[#allocation5 + $0xc0] sm:$0xff] }
  0xc9   :  { %v611_v56 = vsel %vm2588_vm9, %v598_v21, %v417_v46  ;;  %v685_v46 = vld [vmem:[#allocation5] sm:$0xff] }
  0xca   :  { %v1950_v59 = vpop.permute.xlu1 %257  ;;  %1391 = vmatprep.subr.bf16.mxu0 %v1390_v31  ;;  %v1952_v61 = vpop.permute.xlu0 %90  ;;  %v736_v62 = vmul.f32 %v688_v47, %v611_v56  ;;  %v647_v39 = vsel %vm646_vm6, %v634_v3, %v498_v51  ;;  %v784_v47 = vld [vmem:[%s2583_s2 + $0x8] sm:$0xff] }
  0xcb   :  { %v106_v7 = vsel %vm2589_vm7, %v1952_v61, %v1854_v49  ;;  %v745_v30 = vmul.f32 %v697_v15, %v647_v39 }
  0xcc   :  { %v595_v16 = vsel %vm2587_vm8, %v106_v7, %v378_v58  ;;  %240 = vrot.lane.b32.xlu1 %v1658_v5, %s1560_s16  ;;  %238 = vrot.lane.b32.xlu0 %v1651_v4, %s1560_s16  ;;  %v1400_v17 = vpack.c.bf16 %v748_v63, %v736_v62 }
  0xcd   :  { %v608_v23 = vsel %vm2588_vm9, %v595_v16, %v414_v2 }
  0xce   :  { %v262_v49 = vpop.permute.xlu1 %261  ;;  %1401 = vmatprep.subr.bf16.mxu1 %v1400_v17  ;;  %v260_v25 = vpop.permute.xlu0 %259  ;;  %v733_v29 = vmul.f32 %v685_v46, %v608_v23 }
  0xcf   :  { %1403 = vmatpush1.bf16.msra.mxu1 %v1402_v19  ;;  %v288_v13 = vsel %vm2586_vm10, %v260_v25, %v262_v49 }
  0xd0   :  { %86 = vrot.lane.b32.xlu1 %v1788_v22, %s1561_s17  ;;  %84 = vrot.lane.b32.xlu0 %v1746_v10, %s1561_s17  ;;  %v1392_v33 = vpack.c.bf16 %v745_v30, %v733_v29  ;;  %v536_v17 = vrot.slane %v288_v13, 6 }
  0xd2   :  { %v1972_v35 = vpop.permute.xlu1 %255  ;;  %1393 = vmatpush1.bf16.msra.mxu0 %v1392_v33  ;;  %v1974_v36 = vpop.permute.xlu0 %263 }
  0xd3   :  { %v287_v15 = vsel %vm2586_vm10, %v262_v49, %v1974_v36 }
  0xd4   :  { %273 = vrot.lane.b32.xlu1 %v1788_v22, %s1562_s18  ;;  %88 = vrot.lane.b32.xlu0 %v1651_v4, %s1561_s17  ;;  %v537_v33 = vrot.slane %v287_v15, 6  ;;  %v476_v15 = vcombine.low %v1670_v6, %v1670_v6 }
  0xd6   :  { %v297_v2 = vpop.permute.xlu1 %296  ;;  %v1980_v37 = vpop.permute.xlu0 %294  ;;  %v663_v60 = vsel %vm659_vm12, %v501_v12, %v537_v33 }
  0xd7   :  { %v326_v63 = vsel %vm316_vm11, %v1980_v37, %v297_v2 }
  0xd8   :  { %277 = vrot.lane.b32.xlu1 %v1658_v5, %s1562_s18  ;;  %275 = vrot.lane.b32.xlu0 %v1651_v4, %s1562_s18  ;;  %v571_v16 = vrot.slane %v326_v63, 3  ;;  %v723_v63 = vld [vmem:[#allocation5 + $0x130] sm:$0x7] }
  0xda   :  { %v1986_v9 = vpop.permute.xlu1 %300  ;;  %v299_v43 = vpop.permute.xlu0 %298 }
  0xdb   :  { %v325_v46 = vsel %vm316_vm11, %v297_v2, %v299_v43  ;;  %v324_v19 = vsel %vm316_vm11, %v299_v43, %v1986_v9  ;;  %v662_v43 = vsel %vm659_vm12, %v500_v20, %v536_v17  ;;  %v724_v17 = vld [vmem:[#allocation5 + $0x138] sm:$0x7] }
  0xdc   :  { %312 = vrot.lane.b32.xlu1 %v1651_v4, %s1563_s19  ;;  %310 = vrot.lane.b32.xlu0 %v1788_v22, %s1563_s19  ;;  %v573_v2 = vrot.slane %v324_v19, 3 }
  0xde   :  { %v1992_v44 = vpop.permute.xlu1 %152  ;;  %v1994_v45 = vpop.permute.xlu0 %292 }
  0xdf   :  { %v2012_v42 = vsel %vm168_vm1, %v1764_v14, %v1992_v44  ;;  %v327_v12 = vsel %vm316_vm11, %v1994_v45, %v1980_v37 }
  0xe0   :  { %347 = vrot.lane.b32.xlu1 %v1788_v22, %s1564_s20  ;;  %314 = vrot.lane.b32.xlu0 %v1658_v5, %s1563_s19  ;;  %v783_v22 = vld [vmem:[%s2583_s2] sm:$0xff]  ;;  %v418_v14 = vrot.slane %v2012_v42, 2 }
  0xe2   :  { %v2000_v1 = vpop.permute.xlu1 %156  ;;  %v2002_v34 = vpop.permute.xlu0 %154 }
  0xe4   :  { %351 = vrot.lane.b32.xlu1 %v1658_v5, %s1564_s20  ;;  %349 = vrot.lane.b32.xlu0 %v1651_v4, %s1564_s20  ;;  %v1566_v5 = vmov 0  }
  0xe5   :  { %1466 = vset.pattern.permute.xlu0 %v1566_v5  ;;  %1467 = vset.pattern.permute.xlu1 %v1566_v5  ;;  %v290_v5 = vsel %vm2586_vm10, %v1972_v35, %v1950_v59 }
  0xe6   :  { %v190_v48 = vpop.permute.xlu1 %189  ;;  %v2020_v21 = vpop.permute.xlu0 %158 }
  0xe7   :  { %v213_v31 = vsel %vm205_vm0, %v1774_v18, %v190_v48  ;;  %v289_v18 = vsel %vm2586_vm10, %v1950_v59, %v260_v25  ;;  %v572_v25 = vrot.slane %v325_v46, 3  ;;  %v534_v59 = vrot.slane %v290_v5, 6  ;;  %vm2088_vm10 = vmpackc.low %vm2587_vm8, %vm1567_vm15 }
  0xe8   :  { %v454_v52 = vrot.slane %v213_v31, 7  ;;  %787 = vperm.xlu0 %1466, %v783_v22   ;;  %792 = vperm.xlu1 %1467, %v784_v47   ;;  %v535_v39 = vrot.slane %v289_v18, 6  ;;  %v710_v22 = vld [vmem:[#allocation5 + $0xc8] sm:$0xff]  ;;  %v676_v46 = vsel %vm672_vm13, %v663_v60, %v573_v2  ;;  %vm795_vm15 = vcmask 220160  }
  0xe9   :  { %v722_v47 = vld [vmem:[#allocation5 + $0x128] sm:$0x7] }
  0xea   :  { %v2029_v53 = vsel %vm620_vm3, %v418_v14, %v454_v52  ;;  %v2031_v56 = vpop.permute.xlu1 %193  ;;  %v192_v57 = vpop.permute.xlu0 %191  ;;  %v661_v30 = vsel %vm659_vm12, %v499_v54, %v535_v39  ;;  %v675_v54 = vsel %vm672_vm13, %v662_v43, %v572_v25  ;;  %v711_v52 = vld [vmem:[#allocation5 + $0xd0] sm:$0xff] }
  0xeb   :  { %v674_v49 = vsel %vm672_vm13, %v661_v30, %v571_v16  ;;  %v712_v16 = vld [vmem:[#allocation5 + $0xd8] sm:$0xff]  ;;  %v212_v19 = vsel %vm205_vm0, %v190_v48, %v192_v57  ;;  %v759_v25 = vmul.f32 %v711_v52, %v675_v54  ;;  %v211_v2 = vsel %vm205_vm0, %v192_v57, %v2031_v56 }
  0xec   :  { %v758_v20 = vmul.f32 %v710_v22, %v674_v49  ;;  %v2115_v48 = vsel %vm168_vm1, %v1992_v44, %v2002_v34  ;;  %v760_v5 = vmul.f32 %v712_v16, %v676_v46  ;;  %v638_v54 = vsel %vm633_vm5, %v2029_v53, %v476_v15 }
  0xed   :  { %v456_v44 = vrot.slane %v211_v2, 7  ;;  %v2142_v53 = vsel %vm168_vm1, %v2000_v1, %v2020_v21 }
  0xee   :  { %v2034_v58 = vpop.permute.xlu1 %115  ;;  %v2036_v62 = vpop.permute.xlu0 %195 }
  0xef   :  { %v210_v52 = vsel %vm205_vm0, %v2031_v56, %v2036_v62  ;;  %v660_v56 = vsel %vm659_vm12, %v498_v51, %v534_v59  ;;  %v721_v51 = vld [vmem:[#allocation5 + $0x120] sm:$0x7]  ;;  %v421_v59 = vrot.slane %v2142_v53, 2 }
  0xf2   :  { %v2045_v3 = vpop.permute.xlu1 %119  ;;  %v2047_v7 = vpop.permute.xlu0 %117 }
  0xf6   :  { %v2059_v23 = vpop.permute.xlu1 %331  ;;  %v2061_v29 = vpop.permute.xlu0 %121 }
  0xfa   :  { %v336_v41 = vpop.permute.xlu1 %335  ;;  %v334_v31 = vpop.permute.xlu0 %333 }
  0xfb   :  { %v363_v18 = vsel %vm353_vm14, %v2059_v23, %v334_v31  ;;  %v362_v13 = vsel %vm353_vm14, %v334_v31, %v336_v41  ;;  %v570_v31 = vrot.slane %v327_v12, 3 }
  0xfc   :  { %v770_v39 = vmul.f32 %v722_v47, %v363_v18  ;;  %v771_v22 = vmul.f32 %v723_v63, %v362_v13 }
  0xfd   :  { %v673_v15 = vsel %vm672_vm13, %v660_v56, %v570_v31  ;;  %v702_v56 = vld [vmem:[#allocation5 + $0x88] sm:$0xff] }
  0xfe   :  { %v1394_v30 = vpack.c.bf16 %v770_v39, %v758_v20  ;;  %v229_v33 = vpop.permute.xlu1 %228  ;;  %v2098_v49 = vpop.permute.xlu0 %337  ;;  %v1407_v13 = vpack.c.bf16 %v771_v22, %v759_v25 }
  0xff   :  { %v2106_v47 = vsel %vm242_vm2, %v1856_v50, %v229_v33  ;;  %v361_v37 = vsel %vm353_vm14, %v336_v41, %v2098_v49  ;;  %v2124_v50 = vsel %vm168_vm1, %v2002_v34, %v2000_v1  ;;  %v455_v41 = vrot.slane %v212_v19, 7 }
 0x100   :  { %v502_v43 = vrot.slane %v2106_v47, 1  ;;  %v772_v57 = vmul.f32 %v724_v17, %v361_v37  ;;  %1396 = vmatprep.subr.msk.bf16.mxu0 %vm2088_vm10, %v1394_v30  ;;  %v419_v34 = vrot.slane %v2115_v48, 2  ;;  %v420_v39 = vrot.slane %v2124_v50, 2  ;;  %v2188_v37 = vld [vmem:[%s2582_s1] sm:$0xff] }
 0x101   :  { %v457_v1 = vrot.slane %v210_v52, 7  ;;  %v477_v17 = vcombine.low %v1706_v8, %v1706_v8  ;;  %v139_v19 = vsel %vm131_vm4, %v1790_v24, %v2034_v58  ;;  %v701_v52 = vld [vmem:[#allocation5 + $0x80] sm:$0xff] }
 0x102   :  { %v2135_v18 = vsel %vm646_vm6, %v638_v54, %v502_v43  ;;  %v1404_v60 = vpack.c.bf16 %v772_v57, %v760_v5  ;;  %v233_v63 = vpop.permute.xlu1 %232  ;;  %v231_v20 = vpop.permute.xlu0 %230  ;;  %v626_v16 = vsel %vm620_vm3, %v419_v34, %v455_v41  ;;  %v627_v12 = vsel %vm620_vm3, %v420_v39, %v456_v44 }
 0x103   :  { %v2150_v46 = vsel %vm242_vm2, %v229_v33, %v231_v20  ;;  %v138_v33 = vsel %vm131_vm4, %v2034_v58, %v2047_v7  ;;  %v2178_v2 = vsel %vm242_vm2, %v231_v20, %v233_v63  ;;  %v639_v48 = vsel %vm633_vm5, %v626_v16, %v1670_v6  ;;  %v689_v16 = vld [vmem:[#allocation5 + $0x20] sm:$0xff] }
 0x104   :  { %1406 = vmatprep.subr.msk.bf16.mxu1 %vm2088_vm10, %v1404_v60  ;;  %v503_v22 = vrot.slane %v2150_v46, 1  ;;  %v757_v58 = vmul.f32 %v709_v0, %v673_v15  ;;  %v382_v31 = vrot.slane %v139_v19, 5  ;;  %v137_v6 = vsel %vm131_vm4, %v2047_v7, %v2045_v3  ;;  %v2225_v0 = vld [vmem:[%s2582_s1 + $0x8] sm:$0xff]  ;;  %s1568_s1 = smov [#allocation7]  }
 0x105   :  { %1409 = vmatpush1.bf16.msk.msra.mxu1 %vm2088_vm10, %v1407_v13  ;;  %v640_v41 = vsel %vm633_vm5, %v627_v12, %v477_v17  ;;  %v383_v54 = vrot.slane %v138_v33, 5  ;;  %v136_v44 = vsel %vm131_vm4, %v2045_v3, %v2061_v29  ;;  %v504_v60 = vrot.slane %v2178_v2, 1  ;;  %v690_v17 = vld [vmem:[#allocation5 + $0x28] sm:$0xff]  ;;  %s1353_s28 = sshll.u32 %s1568_s1, 4  ;;  %s1354_s28 = int_to_ptr.vmem [resolvable:$true] %s1353_s28 }
 0x106   :  { %v2168_v25 = vpop.permute.xlu1 %329  ;;  %v2170_v30 = vpop.permute.xlu0 %234  ;;  %v652_v7 = vsel %vm646_vm6, %v639_v48, %v503_v22  ;;  %v385_v33 = vrot.slane %v136_v44, 5  ;;  %v692_v44 = vld [vmem:[#allocation5 + $0x38] sm:$0xff]  ;;  %s1525_s29 = scalar_lea.vmem %s1354_s28, 3072  ;;  %p1530_p3 = scmp.lt.s32.totalorder %s1354_s28, %s1354_s28 }
 0x107   :  { %v364_v24 = vsel %vm353_vm14, %v2168_v25, %v2059_v23  ;;  %v2195_v57 = vsel %vm242_vm2, %v233_v63, %v2170_v30  ;;  %v628_v23 = vsel %vm620_vm3, %v421_v59, %v457_v1  ;;  %p1526_p2 = scmp.ne.s32.totalorder %s1354_s28, %s1525_s29  ;;  %p1531_p4 = scmp.lt.s32.totalorder %s1525_s29, %s1525_s29 }
 0x108   :  { %v769_v5 = vmul.f32 %v721_v51, %v364_v24  ;;  %1372 = vmatmul.mubr.msk.f32.vlgmr.msra.gmra.mrb[0].mxu1 %vm795_vm15, %v2188_v37  ;;  %v505_v15 = vrot.slane %v2195_v57, 1  ;;  %v641_v51 = vsel %vm633_vm5, %v628_v23, %v1706_v8  ;;  %v749_v8 = vmul.f32 %v701_v52, %v2135_v18  ;;  %v704_v52 = vld [vmem:[#allocation5 + $0x98] sm:$0xff] }
 0x109   :  { %985 = vmatprep.mubr.f32.mxu1 %v1565_v11  ;;  %p1532_p5 = por %p1531_p4, %p1530_p3 }
 0x10a   :  { %v1397_v63 = vpack.c.bf16 %v769_v5, %v757_v58  ;;  %v79_v20 = vpop.permute.xlu1 %78  ;;  %v77_v13 = vpop.permute.xlu0 %76  ;;  %v703_v58 = vld [vmem:[#allocation5 + $0x90] sm:$0xff]  ;;  %v654_v42 = vsel %vm646_vm6, %v641_v51, %v505_v15 }
 0x10b   :  { %v101_v1 = vsel %vm2589_vm7, %v77_v13, %v79_v20  ;;  %v102_v3 = vsel %vm2589_vm7, %v1919_v40, %v77_v13  ;;  %v384_v40 = vrot.slane %v137_v6, 5  ;;  %v653_v6 = vsel %vm646_vm6, %v640_v41, %v504_v60  ;;  %p1533_p6 = pnand %p1532_p5, %p1526_p2 }
 0x10c   :  { %v599_v12 = vsel %vm2587_vm8, %v102_v3, %v382_v31  ;;  %v600_v19 = vsel %vm2587_vm8, %v101_v1, %v383_v54  ;;  %1399 = vmatpush1.bf16.msk.msra.mxu0 %vm2088_vm10, %v1397_v63  ;;  %1373 = vmatmul.mubr.msk.f32.gmra.mrb[2].mxu1 %vm795_vm15, %v2225_v0  ;;  %v750_v63 = vmul.f32 %v702_v56, %v652_v7 }
 0x10d   :  { %v612_v24 = vsel %vm2588_vm9, %v599_v12, %v418_v14  ;;  %v613_v48 = vsel %vm2588_vm9, %v600_v19, %v419_v34  ;;  %1133 = vmatprep.mubr.f32.mxu1 %v1565_v11  ;;  %v691_v14 = vld [vmem:[#allocation5 + $0x30] sm:$0xff]  ;;  %v751_v1 = vmul.f32 %v703_v58, %v653_v6  ;;  %v752_v19 = vmul.f32 %v704_v52, %v654_v42 }
 0x10e   :  { %v737_v5 = vmul.f32 %v689_v16, %v612_v24  ;;  %v2241_v31 = vpop.permute.xlu1 %82  ;;  %v81_v23 = vpop.permute.xlu0 %80  ;;  %v738_v54 = vmul.f32 %v690_v17, %v613_v48 }
 0x10f   :  { %v99_v18 = vsel %vm2589_vm7, %v81_v23, %v2241_v31  ;;  %v100_v34 = vsel %vm2589_vm7, %v79_v20, %v81_v23  ;;  %1368 = vmatmul.mubr.msk.f32.vlgmr.msra.gmra.mrb[0].mxu0 %vm795_vm15, %v2188_v37 }
 0x110   :  { %v601_v13 = vsel %vm2587_vm8, %v100_v34, %v384_v40  ;;  %v602_v41 = vsel %vm2587_vm8, %v99_v18, %v385_v33  ;;  %v1410_v56 = vpack.c.bf16 %v750_v63, %v738_v54  ;;  %v1412_v7 = vpack.c.bf16 %v749_v8, %v737_v5  ;;  %908 = vmatprep.mubr.f32.mxu0 %v1565_v11 }
 0x111   :  { %v614_v16 = vsel %vm2588_vm9, %v601_v13, %v420_v39  ;;  %v615_v20 = vsel %vm2588_vm9, %v602_v41, %v421_v59  ;;  %vm2592_vm8 = vcmp.lt.s32.totalorder %v1796_v26, 113 }
 0x112   :  { %v739_v3 = vmul.f32 %v691_v14, %v614_v16  ;;  %v268_v17 = vpop.permute.xlu1 %267  ;;  %1411 = vmatprep.subr.bf16.mxu0 %v1410_v56  ;;  %v266_v51 = vpop.permute.xlu0 %265  ;;  %v740_v12 = vmul.f32 %v692_v44, %v615_v20  ;;  %vm2593_vm9 = vmmov %vm2592_vm8 }
 0x113   :  { %v286_v40 = vsel %vm2592_vm8, %v1974_v36, %v266_v51  ;;  %1413 = vmatpush1.bf16.msra.mxu0 %v1412_v7  ;;  %vm2594_vm7 = vmmov %vm2592_vm8 }
 0x114   :  { %v538_v33 = vrot.slane %v286_v40, 6  ;;  %v1420_v50 = vpack.c.bf16 %v752_v19, %v740_v12  ;;  %v1422_v24 = vpack.c.bf16 %v751_v1, %v739_v3  ;;  %1369 = vmatmul.mubr.msk.f32.gmra.mrb[2].mxu0 %vm795_vm15, %v2225_v0 }
 0x115   :  { %1056 = vmatprep.mubr.f32.mxu0 %v1565_v11 }
 0x116   :  { %v664_v53 = vsel %vm659_vm12, %v502_v43, %v538_v33  ;;  %v2274_v39 = vpop.permute.xlu1 %271  ;;  %1421 = vmatprep.subr.bf16.mxu1 %v1420_v50  ;;  %v270_v59 = vpop.permute.xlu0 %269  ;;  %v713_v33 = vld [vmem:[#allocation5 + $0xe0] sm:$0xff] }
 0x117   :  { %1423 = vmatpush1.bf16.msra.mxu1 %v1422_v24  ;;  %v284_v7 = vsel %vm2594_vm7, %v268_v17, %v270_v59  ;;  %v725_v24 = vld [vmem:[#allocation5 + $0x140] sm:$0x7] }
 0x118   :  { %v540_v3 = vrot.slane %v284_v7, 6  ;;  %v716_v7 = vld [vmem:[#allocation5 + $0xf8] sm:$0xff] }
 0x11a   :  { %v305_v48 = vpop.permute.xlu1 %304  ;;  %v303_v36 = vpop.permute.xlu0 %302 }
 0x11b   :  { %v323_v8 = vsel %vm316_vm11, %v1986_v9, %v303_v36  ;;  %v322_v13 = vsel %vm316_vm11, %v303_v36, %v305_v48 }
 0x11c   :  { %v574_v58 = vrot.slane %v323_v8, 3  ;;  %v575_v20 = vrot.slane %v322_v13, 3  ;;  %v714_v8 = vld [vmem:[#allocation5 + $0xe8] sm:$0xff] }
 0x11e   :  { %v677_v5 = vsel %vm672_vm13, %v664_v53, %v574_v58  ;;  %v2280_v23 = vpop.permute.xlu1 %308  ;;  %v307_v54 = vpop.permute.xlu0 %306  ;;  %v726_v58 = vld [vmem:[#allocation5 + $0x148] sm:$0x7] }
 0x11f   :  { %v320_v1 = vsel %vm316_vm11, %v307_v54, %v2280_v23  ;;  %v321_v12 = vsel %vm316_vm11, %v305_v48, %v307_v54  ;;  %v666_v48 = vsel %vm659_vm12, %v504_v60, %v540_v3 }
 0x120   :  { %v576_v36 = vrot.slane %v321_v12, 3 }
 0x122   :  { %v163_v47 = vpop.permute.xlu1 %162  ;;  %v161_v63 = vpop.permute.xlu0 %160 }
 0x123   :  { %v2285_v43 = vsel %vm168_vm1, %v2020_v21, %v161_v63  ;;  %v285_v21 = vsel %vm2592_vm8, %v266_v51, %v268_v17  ;;  %v577_v17 = vrot.slane %v320_v1, 3  ;;  %v728_v1 = vld [vmem:[#allocation5 + $0x158] sm:$0x7] }
 0x124   :  { %v422_v9 = vrot.slane %v2285_v43, 2  ;;  %v539_v16 = vrot.slane %v285_v21, 6  ;;  %v695_v43 = vld [vmem:[#allocation5 + $0x50] sm:$0xff] }
 0x126   :  { %v198_v6 = vpop.permute.xlu1 %197  ;;  %v165_v42 = vpop.permute.xlu0 %164  ;;  %v665_v50 = vsel %vm659_vm12, %v503_v22, %v539_v16  ;;  %v761_v22 = vmul.f32 %v713_v33, %v677_v5  ;;  %v679_v16 = vsel %vm672_vm13, %v666_v48, %v576_v36 }
 0x127   :  { %v209_v14 = vsel %vm205_vm0, %v2036_v62, %v198_v6  ;;  %v283_v62 = vsel %vm2593_vm9, %v270_v59, %v2274_v39  ;;  %v678_v59 = vsel %vm672_vm13, %v665_v50, %v575_v20  ;;  %v2355_v3 = vsel %vm168_vm1, %v163_v47, %v165_v42 }
 0x128   :  { %v458_v18 = vrot.slane %v209_v14, 7  ;;  %v541_v51 = vrot.slane %v283_v62, 6  ;;  %v762_v5 = vmul.f32 %v714_v8, %v678_v59  ;;  %v424_v59 = vrot.slane %v2355_v3, 2 }
 0x12a   :  { %v2294_v34 = vsel %vm620_vm3, %v422_v9, %v458_v18  ;;  %v202_v44 = vpop.permute.xlu1 %201  ;;  %v200_v52 = vpop.permute.xlu0 %199  ;;  %v667_v46 = vsel %vm659_vm12, %v505_v15, %v541_v51  ;;  %v478_v18 = vcombine.low %v1746_v10, %v1746_v10  ;;  %v727_v15 = vld [vmem:[#allocation5 + $0x150] sm:$0x7] }
 0x12b   :  { %v208_v21 = vsel %vm205_vm0, %v198_v6, %v200_v52  ;;  %v680_v57 = vsel %vm672_vm13, %v667_v46, %v577_v17  ;;  %v2349_v6 = vsel %vm168_vm1, %v165_v42, %v1800_v28  ;;  %v207_v20 = vsel %vm205_vm0, %v200_v52, %v202_v44 }
 0x12c   :  { %v459_v12 = vrot.slane %v208_v21, 7  ;;  %v425_v52 = vrot.slane %v2349_v6, 2 }
 0x12e   :  { %v2300_v41 = vpop.permute.xlu1 %125  ;;  %v2302_v56 = vpop.permute.xlu0 %123 }
 0x132   :  { %v340_v19 = vpop.permute.xlu1 %339  ;;  %v2314_v40 = vpop.permute.xlu0 %127 }
 0x133   :  { %v360_v53 = vsel %vm353_vm14, %v2098_v49, %v340_v19  ;;  %v206_v49 = vsel %vm205_vm0, %v202_v44, %v1798_v27  ;;  %v2344_v27 = vsel %vm168_vm1, %v161_v63, %v163_v47  ;;  %v460_v47 = vrot.slane %v207_v20, 7 }
 0x134   :  { %v773_v2 = vmul.f32 %v725_v24, %v360_v53  ;;  %v461_v51 = vrot.slane %v206_v49, 7  ;;  %v764_v53 = vmul.f32 %v716_v7, %v680_v57  ;;  %v423_v44 = vrot.slane %v2344_v27, 2 }
 0x135   :  { %vm2595_vm0 = vcmp.lt.s32.totalorder %v1796_v26, 17 }
 0x136   :  { %v344_v54 = vpop.permute.xlu1 %343  ;;  %v342_v14 = vpop.permute.xlu0 %341  ;;  %v1417_v17 = vpack.c.bf16 %v773_v2, %v761_v22  ;;  %v632_v48 = vsel %vm620_vm3, %v425_v52, %v461_v51  ;;  %v630_v46 = vsel %vm620_vm3, %v423_v44, %v459_v12  ;;  %v642_v22 = vsel %vm633_vm5, %v2294_v34, %v478_v18  ;;  %vm2596_vm1 = vmmov %vm2595_vm0  ;;  %v694_v12 = vld [vmem:[#allocation5 + $0x48] sm:$0xff] }
 0x137   :  { %v359_v60 = vsel %vm353_vm14, %v340_v19, %v342_v14  ;;  %v358_v13 = vsel %vm353_vm14, %v342_v14, %v344_v54  ;;  %v715_v19 = vld [vmem:[#allocation5 + $0xf0] sm:$0xff]  ;;  %v631_v34 = vsel %vm620_vm3, %v424_v59, %v460_v47  ;;  %vm2602_vm9 = vmmov %vm2595_vm0 }
 0x138   :  { %v774_v62 = vmul.f32 %v726_v58, %v359_v60  ;;  %v775_v24 = vmul.f32 %v727_v15, %v358_v13  ;;  %v763_v36 = vmul.f32 %v715_v19, %v679_v16  ;;  %v479_v58 = vcombine.low %v1651_v4, %v1651_v4  ;;  %v706_v19 = vld [vmem:[#allocation5 + $0xa8] sm:$0xff] }
 0x139   :  { %v135_v4 = vsel %vm131_vm4, %v2061_v29, %v2302_v56  ;;  %v1480_v29 = vld [vmem:[#allocation2 + $0x28] sm:$0x77]  ;;  %v643_v15 = vsel %vm633_vm5, %v630_v46, %v1746_v10  ;;  %v133_v10 = vsel %vm131_vm4, %v2300_v41, %v2314_v40 }
 0x13a   :  { %v1414_v33 = vpack.c.bf16 %v774_v62, %v762_v5  ;;  %v237_v50 = vpop.permute.xlu1 %236  ;;  %v2357_v63 = vpop.permute.xlu0 %345  ;;  %v1427_v21 = vpack.c.bf16 %v775_v24, %v763_v36  ;;  %v132_v62 = vsel %vm131_vm4, %v2314_v40, %v1817_v32  ;;  %v644_v24 = vsel %vm633_vm5, %v631_v34, %v479_v58 }
 0x13b   :  { %v357_v28 = vsel %vm353_vm14, %v344_v54, %v2357_v63  ;;  %v2370_v8 = vsel %vm242_vm2, %v2170_v30, %v237_v50  ;;  %v134_v30 = vsel %vm131_vm4, %v2302_v56, %v2300_v41  ;;  %v645_v56 = vsel %vm633_vm5, %v632_v48, %v1480_v29  ;;  %vm2601_vm5 = vmmov %vm2595_vm0 }
 0x13c   :  { %v776_v42 = vmul.f32 %v728_v1, %v357_v28  ;;  %1416 = vmatprep.subr.msk.bf16.mxu0 %vm2088_vm10, %v1414_v33  ;;  %v506_v18 = vrot.slane %v2370_v8, 1  ;;  %v387_v13 = vrot.slane %v134_v30, 5  ;;  %v693_v1 = vld [vmem:[#allocation5 + $0x40] sm:$0xff]  ;;  %vm2599_vm4 = vcmask 1045504   ;;  %v707_v30 = vld [vmem:[#allocation5 + $0xb0] sm:$0xff] }
 0x13d   :  { %1419 = vmatpush1.bf16.msk.msra.mxu0 %vm2088_vm10, %v1417_v17  ;;  %v705_v33 = vld [vmem:[#allocation5 + $0xa0] sm:$0xff]  ;;  %vm2600_vm7 = vmmov %vm2599_vm4  ;;  %v389_v47 = vrot.slane %v132_v62, 5 }
 0x13e   :  { %v1424_v54 = vpack.c.bf16 %v776_v42, %v764_v53  ;;  %v241_v14 = vpop.permute.xlu1 %240  ;;  %v239_v49 = vpop.permute.xlu0 %238  ;;  %v655_v41 = vsel %vm646_vm6, %v642_v22, %v506_v18 }
 0x13f   :  { %v2392_v2 = vsel %vm242_vm2, %v237_v50, %v239_v49  ;;  %v2401_v60 = vsel %vm242_vm2, %v241_v14, %v1917_v38  ;;  %v2413_v5 = vsel %vm242_vm2, %v239_v49, %v241_v14  ;;  %v386_v38 = vrot.slane %v135_v4, 5  ;;  %v696_v14 = vld [vmem:[#allocation5 + $0x58] sm:$0xff] }
 0x140   :  { %v507_v57 = vrot.slane %v2392_v2, 1  ;;  %1426 = vmatprep.subr.msk.bf16.mxu1 %vm2088_vm10, %v1424_v54  ;;  %1376 = vmatmul.mubr.msk.f32.vlgmr.msra.gmra.mrb[4].mxu0 %vm795_vm15, %v2188_v37  ;;  %v509_v27 = vrot.slane %v2401_v60, 1  ;;  %v508_v40 = vrot.slane %v2413_v5, 1  ;;  %vm2597_vm2 = vcmask 1042432   ;;  %v708_v49 = vld [vmem:[#allocation5 + $0xb8] sm:$0xff] }
 0x141   :  { %1429 = vmatpush1.bf16.msk.msra.mxu1 %vm2088_vm10, %v1427_v21  ;;  %1062 = vmatprep.mubr.f32.mxu0 %v1565_v11  ;;  %vm2598_vm3 = vmmov %vm2597_vm2  ;;  %v753_v54 = vmul.f32 %v705_v33, %v655_v41 }
 0x142   :  { %v87_v7 = vpop.permute.xlu1 %86  ;;  %v85_v16 = vpop.permute.xlu0 %84  ;;  %v656_v20 = vsel %vm646_vm6, %v643_v15, %v507_v57  ;;  %v658_v58 = vsel %vm646_vm6, %v645_v56, %v509_v27  ;;  %v657_v4 = vsel %vm646_vm6, %v644_v24, %v508_v40  ;;  %vm2603_vm8 = vmmov %vm2597_vm2  ;;  %vm2607_vm6 = vcmp.lt.s32.totalorder %v1796_v26, 113 }
 0x143   :  { %v97_v51 = vsel %vm2595_vm0, %v85_v16, %v87_v7  ;;  %v98_v32 = vsel %vm2596_vm1, %v2241_v31, %v85_v16  ;;  %v388_v31 = vrot.slane %v133_v10, 5  ;;  %v754_v22 = vmul.f32 %v706_v19, %v656_v20  ;;  %vm2604_vm0 = vmmov %vm2597_vm2 }
 0x144   :  { %v603_v50 = vsel %vm2597_vm2, %v98_v32, %v386_v38  ;;  %v604_v17 = vsel %vm2598_vm3, %v97_v51, %v387_v13  ;;  %1380 = vmatmul.mubr.msk.f32.vlgmr.msra.gmra.mrb[4].mxu1 %vm795_vm15, %v2188_v37  ;;  %1377 = vmatmul.mubr.msk.f32.gmra.mrb[6].mxu0 %vm795_vm15, %v2225_v0  ;;  %vm2605_vm1 = vmmov %vm2599_vm4  ;;  %v755_v16 = vmul.f32 %v707_v30, %v657_v4 }
 0x145   :  { %v616_v53 = vsel %vm2599_vm4, %v603_v50, %v422_v9  ;;  %v617_v28 = vsel %vm2600_vm7, %v604_v17, %v423_v44  ;;  %1139 = vmatprep.mubr.f32.mxu1 %v1565_v11  ;;  %1210 = vmatprep.mubr.f32.mxu0 %v1565_v11  ;;  %vm2606_vm2 = vmmov %vm2605_vm1 }
 0x146   :  { %v741_v42 = vmul.f32 %v693_v1, %v616_v53  ;;  %v274_v36 = vpop.permute.xlu1 %273  ;;  %v89_v48 = vpop.permute.xlu0 %88  ;;  %v742_v46 = vmul.f32 %v694_v12, %v617_v28  ;;  %vm2608_vm3 = vmmov %vm2607_vm6 }
 0x147   :  { %v95_v9 = vsel %vm2601_vm5, %v89_v48, %v1952_v61  ;;  %v96_v44 = vsel %vm2602_vm9, %v87_v7, %v89_v48  ;;  %v756_v7 = vmul.f32 %v708_v49, %v658_v58  ;;  %v282_v3 = vsel %vm2607_vm6, %v2274_v39, %v274_v36  ;;  %vm2609_vm4 = vmmov %vm2608_vm3  ;;  %v729_v58 = vld [vmem:[#allocation5 + $0x160] sm:$0x7]  ;;  %v730_v49 = vld [vmem:[#allocation5 + $0x168] sm:$0x7] }
 0x148   :  { %v605_v21 = vsel %vm2603_vm8, %v96_v44, %v388_v31  ;;  %v606_v34 = vsel %vm2604_vm0, %v95_v9, %v389_v47  ;;  %v1430_v29 = vpack.c.bf16 %v754_v22, %v742_v46  ;;  %1381 = vmatmul.mubr.msk.f32.gmra.mrb[6].mxu1 %vm795_vm15, %v2225_v0  ;;  %v1432_v15 = vpack.c.bf16 %v753_v54, %v741_v42  ;;  %vm2610_vm7 = vmmov %vm2608_vm3  ;;  %v717_v47 = vld [vmem:[#allocation5 + $0x100] sm:$0xff]  ;;  %v720_v46 = vld [vmem:[#allocation5 + $0x118] sm:$0xff] }
 0x149   :  { %v618_v61 = vsel %vm2605_vm1, %v605_v21, %v424_v59  ;;  %v619_v56 = vsel %vm2606_vm2, %v606_v34, %v425_v52  ;;  %1287 = vmatprep.mubr.f32.mxu1 %v1565_v11  ;;  %v542_v6 = vrot.slane %v282_v3, 6  ;;  %v719_v22 = vld [vmem:[#allocation5 + $0x110] sm:$0xff] }
 0x14a   :  { %v743_v38 = vmul.f32 %v695_v43, %v618_v61  ;;  %v278_v13 = vpop.permute.xlu1 %277  ;;  %1431 = vmatprep.subr.bf16.mxu0 %v1430_v29  ;;  %v276_v62 = vpop.permute.xlu0 %275  ;;  %v744_v10 = vmul.f32 %v696_v14, %v619_v56  ;;  %v732_v43 = vld [vmem:[#allocation5 + $0x178] sm:$0x7]  ;;  %v731_v9 = vld [vmem:[#allocation5 + $0x170] sm:$0x7] }
 0x14b   :  { %1433 = vmatpush1.bf16.msra.mxu0 %v1432_v15  ;;  %v291_v52 = vsel %vm2608_vm3, %v278_v13, %v1972_v35  ;;  %v280_v1 = vsel %vm2609_vm4, %v276_v62, %v278_v13  ;;  %v281_v51 = vsel %vm2610_vm7, %v274_v36, %v276_v62  ;;  %v668_v17 = vsel %vm659_vm12, %v506_v18, %v542_v6 }
 0x14c   :  { %v1440_v59 = vpack.c.bf16 %v756_v7, %v744_v10  ;;  %v1442_v20 = vpack.c.bf16 %v755_v16, %v743_v38  ;;  %v545_v41 = vrot.slane %v291_v52, 6  ;;  %v543_v35 = vrot.slane %v281_v51, 6 }
 0x14d   :  { %v544_v50 = vrot.slane %v280_v1, 6 }
 0x14e   :  { %v313_v32 = vpop.permute.xlu1 %312  ;;  %1441 = vmatprep.subr.bf16.mxu1 %v1440_v59  ;;  %v311_v12 = vpop.permute.xlu0 %310  ;;  %v671_v8 = vsel %vm659_vm12, %v509_v27, %v545_v41  ;;  %v669_v18 = vsel %vm659_vm12, %v507_v57, %v543_v35  ;;  %v718_v57 = vld [vmem:[#allocation5 + $0x108] sm:$0xff] }
 0x14f   :  { %v318_v39 = vsel %vm316_vm11, %v311_v12, %v313_v32  ;;  %v319_v19 = vsel %vm316_vm11, %v2280_v23, %v311_v12  ;;  %1443 = vmatpush1.bf16.msra.mxu1 %v1442_v20  ;;  %v670_v54 = vsel %vm659_vm12, %v508_v40, %v544_v50 }
 0x150   :  { %v578_v33 = vrot.slane %v319_v19, 3  ;;  %v579_v31 = vrot.slane %v318_v39, 3 }
 0x152   :  { %v348_v24 = vpop.permute.xlu1 %347  ;;  %v315_v53 = vpop.permute.xlu0 %314  ;;  %v681_v28 = vsel %vm672_vm13, %v668_v17, %v578_v33  ;;  %v682_v44 = vsel %vm672_vm13, %v669_v18, %v579_v31 }
 0x153   :  { %v317_v42 = vsel %vm316_vm11, %v313_v32, %v315_v53  ;;  %v328_v23 = vsel %vm316_vm11, %v315_v53, %v1994_v45  ;;  %v356_v45 = vsel %vm353_vm14, %v2357_v63, %v348_v24  ;;  %v765_v60 = vmul.f32 %v717_v47, %v681_v28 }
 0x154   :  { %v580_v36 = vrot.slane %v317_v42, 3  ;;  %v581_v48 = vrot.slane %v328_v23, 3  ;;  %v777_v21 = vmul.f32 %v729_v58, %v356_v45  ;;  %v766_v56 = vmul.f32 %v718_v57, %v682_v44 }
 0x156   :  { %v683_v27 = vsel %vm672_vm13, %v670_v54, %v580_v36  ;;  %v684_v2 = vsel %vm672_vm13, %v671_v8, %v581_v48  ;;  %v352_v14 = vpop.permute.xlu1 %351  ;;  %v350_v5 = vpop.permute.xlu0 %349  ;;  %v1437_v10 = vpack.c.bf16 %v777_v21, %v765_v60 }
 0x157   :  { %v365_v40 = vsel %vm353_vm14, %v352_v14, %v2168_v25  ;;  %v768_v30 = vmul.f32 %v720_v46, %v684_v2  ;;  %v767_v4 = vmul.f32 %v719_v22, %v683_v27  ;;  %v354_v63 = vsel %vm353_vm14, %v350_v5, %v352_v14 }
 0x158   :  { %v780_v34 = vmul.f32 %v732_v43, %v365_v40  ;;  %v355_v29 = vsel %vm353_vm14, %v348_v24, %v350_v5  ;;  %v779_v61 = vmul.f32 %v731_v9, %v354_v63 }
 0x159   :  { %v778_v15 = vmul.f32 %v730_v49, %v355_v29 }
 0x15a   :  { %v1444_v38 = vpack.c.bf16 %v780_v34, %v768_v30  ;;  %v1447_v13 = vpack.c.bf16 %v779_v61, %v767_v4 }
 0x15b   :  { %v1434_v62 = vpack.c.bf16 %v778_v15, %v766_v56 }
 0x15c   :  { %1446 = vmatprep.subr.msk.bf16.mxu1 %vm2088_vm10, %v1444_v38 }
 0x15d   :  { %1436 = vmatprep.subr.msk.bf16.mxu0 %vm2088_vm10, %v1434_v62  ;;  %1449 = vmatpush1.bf16.msk.msra.mxu1 %vm2088_vm10, %v1447_v13 }
 0x15e   :  { %1439 = vmatpush1.bf16.msk.msra.mxu0 %vm2088_vm10, %v1437_v10 }
 0x160   :  { %1388 = vmatmul.mubr.msk.f32.vlgmr.msra.gmra.mrb[8].mxu1 %vm795_vm15, %v2188_v37 }
 0x161   :  { %1384 = vmatmul.mubr.msk.f32.vlgmr.msra.gmra.mrb[8].mxu0 %vm795_vm15, %v2188_v37  ;;  %1293 = vmatprep.mubr.f32.mxu1 %v1565_v11 }
 0x162   :  { %1216 = vmatprep.mubr.f32.mxu0 %v1565_v11 }
 0x164   :  { %1389 = vmatmul.mubr.msk.f32.gmra.mrb[10].mxu1 %vm795_vm15, %v2225_v0 }
 0x165   :  { %1385 = vmatmul.mubr.msk.f32.gmra.mrb[10].mxu0 %vm795_vm15, %v2225_v0 }
 0x167   :  { %v2538_v26 = vpop.permute.xlu0 %787  ;;  %v2542_v3 = vpop.permute.xlu1 %792 }
 0x1db   :  { %v981_v55 = vpop.f32.mrb[0].mxu1 }
 0x1dc   :  { %v983_v25 = vpop.f32.mrb[1].mxu1  ;;  %v982_v7 = vadd.f32 %v981_v55, %v2538_v26 }
 0x1dd   :  { %v984_v16 = vadd.f32 %v983_v25, %v2538_v26 }
 0x1de   :  { %v1302_v37 = vmax.f32 %v982_v7, 0.0 }
 0x1df   :  { %v1303_v59 = vmax.f32 %v984_v16, 0.0  ;;  %v987_v20 = vpop.f32.mrb[2].mxu1 }
 0x1e0   :  { %1326 = vst [vmem:[#allocation7 + $0x10] sm:$0xff] %v1302_v37  ;;  %v988_v11 = vadd.f32 %v987_v20, %v2542_v3  ;;  %v989_v6 = vpop.f32.mrb[3].mxu1 }
 0x1e1   :  { %1327 = vst [vmem:[#allocation7 + $0x18] sm:$0xff] %v1303_v59  ;;  %v990_v0 = vadd.f32 %v989_v6, %v2542_v3 }
 0x1e2   :  { %v904_v52 = vpop.f32.mrb[0].mxu0  ;;  %v1314_v1 = vmax.f32 %v988_v11, 0.0 }
 0x1e3   :  { %v906_v51 = vpop.f32.mrb[1].mxu0  ;;  %v905_v32 = vadd.f32 %v904_v52, %v2538_v26  ;;  %v1315_v12 = vmax.f32 %v990_v0, 0.0 }
 0x1e4   :  { %v907_v39 = vadd.f32 %v906_v51, %v2538_v26  ;;  %1338 = vst [vmem:[#allocation7 + $0x70] sm:$0xff] %v1314_v1 }
 0x1e5   :  { %v1300_v19 = vmax.f32 %v905_v32, 0.0  ;;  %1339 = vst [vmem:[#allocation7 + $0x78] sm:$0xff] %v1315_v12 }
 0x1e6   :  { %v1301_v33 = vmax.f32 %v907_v39, 0.0 }
 0x1e7   :  { %1324 = vst [vmem:[#allocation7] sm:$0xff] %v1300_v19  ;;  %v910_v41 = vpop.f32.mrb[2].mxu0 }
 0x1e8   :  { %1325 = vst [vmem:[#allocation7 + $0x8] sm:$0xff] %v1301_v33  ;;  %v911_v35 = vadd.f32 %v910_v41, %v2542_v3  ;;  %v912_v50 = vpop.f32.mrb[3].mxu0 }
 0x1e9   :  { %v913_v17 = vadd.f32 %v912_v50, %v2542_v3 }
 0x1ea   :  { %v1312_v31 = vmax.f32 %v911_v35, 0.0 }
 0x1eb   :  { %v1313_v24 = vmax.f32 %v913_v17, 0.0 }
 0x1ec   :  { %1336 = vst [vmem:[#allocation7 + $0x60] sm:$0xff] %v1312_v31 }
 0x1ed   :  { %1337 = vst [vmem:[#allocation7 + $0x68] sm:$0xff] %v1313_v24 }
 0x213   :  { %v1058_v53 = vpop.f32.mrb[4].mxu0 }
 0x214   :  { %v1059_v28 = vadd.f32 %v1058_v53, %v2538_v26  ;;  %v1060_v47 = vpop.f32.mrb[5].mxu0 }
 0x215   :  { %v1061_v42 = vadd.f32 %v1060_v47, %v2538_v26 }
 0x216   :  { %v1304_v23 = vmax.f32 %v1059_v28, 0.0 }
 0x217   :  { %v1135_v36 = vpop.f32.mrb[4].mxu1  ;;  %v1305_v48 = vmax.f32 %v1061_v42, 0.0  ;;  %v1064_v46 = vpop.f32.mrb[6].mxu0 }
 0x218   :  { %1328 = vst [vmem:[#allocation7 + $0x20] sm:$0xff] %v1304_v23  ;;  %v1136_v22 = vadd.f32 %v1135_v36, %v2538_v26  ;;  %v1137_v8 = vpop.f32.mrb[5].mxu1  ;;  %v1065_v18 = vadd.f32 %v1064_v46, %v2542_v3  ;;  %v1066_v54 = vpop.f32.mrb[7].mxu0 }
 0x219   :  { %1329 = vst [vmem:[#allocation7 + $0x28] sm:$0xff] %v1305_v48  ;;  %v1138_v58 = vadd.f32 %v1137_v8, %v2538_v26  ;;  %v1067_v45 = vadd.f32 %v1066_v54, %v2542_v3 }
 0x21a   :  { %v1306_v43 = vmax.f32 %v1136_v22, 0.0  ;;  %v1316_v9 = vmax.f32 %v1065_v18, 0.0 }
 0x21b   :  { %v1307_v44 = vmax.f32 %v1138_v58, 0.0  ;;  %v1141_v60 = vpop.f32.mrb[6].mxu1  ;;  %v1317_v27 = vmax.f32 %v1067_v45, 0.0 }
 0x21c   :  { %1330 = vst [vmem:[#allocation7 + $0x30] sm:$0xff] %v1306_v43  ;;  %1340 = vst [vmem:[#allocation7 + $0x80] sm:$0xff] %v1316_v9  ;;  %v1142_v2 = vadd.f32 %v1141_v60, %v2542_v3  ;;  %v1143_v14 = vpop.f32.mrb[7].mxu1 }
 0x21d   :  { %1331 = vst [vmem:[#allocation7 + $0x38] sm:$0xff] %v1307_v44  ;;  %1341 = vst [vmem:[#allocation7 + $0x88] sm:$0xff] %v1317_v27  ;;  %v1144_v57 = vadd.f32 %v1143_v14, %v2542_v3 }
 0x21e   :  { %v1318_v49 = vmax.f32 %v1142_v2, 0.0 }
 0x21f   :  { %v1319_v5 = vmax.f32 %v1144_v57, 0.0 }
 0x220   :  { %1342 = vst [vmem:[#allocation7 + $0x90] sm:$0xff] %v1318_v49 }
 0x221   :  { %1343 = vst [vmem:[#allocation7 + $0x98] sm:$0xff] %v1319_v5 }
 0x233   :  { %v1289_v40 = vpop.f32.mrb[8].mxu1 }
 0x234   :  { %v1212_v30 = vpop.f32.mrb[8].mxu0  ;;  %v1290_v4 = vadd.f32 %v1289_v40, %v2538_v26  ;;  %v1291_v63 = vpop.f32.mrb[9].mxu1 }
 0x235   :  { %v1213_v21 = vadd.f32 %v1212_v30, %v2538_v26  ;;  %v1214_v34 = vpop.f32.mrb[9].mxu0  ;;  %v1292_v29 = vadd.f32 %v1291_v63, %v2538_v26 }
 0x236   :  { %v1310_v61 = vmax.f32 %v1290_v4, 0.0  ;;  %v1215_v56 = vadd.f32 %v1214_v34, %v2538_v26 }
 0x237   :  { %v1308_v15 = vmax.f32 %v1213_v21, 0.0  ;;  %v1311_v38 = vmax.f32 %v1292_v29, 0.0  ;;  %v1295_v13 = vpop.f32.mrb[10].mxu1 }
 0x238   :  { %1334 = vst [vmem:[#allocation7 + $0x50] sm:$0xff] %v1310_v61  ;;  %v1309_v62 = vmax.f32 %v1215_v56, 0.0  ;;  %v1218_v10 = vpop.f32.mrb[10].mxu0  ;;  %v1296_v55 = vadd.f32 %v1295_v13, %v2542_v3  ;;  %v1297_v25 = vpop.f32.mrb[11].mxu1 }
 0x239   :  { %1332 = vst [vmem:[#allocation7 + $0x40] sm:$0xff] %v1308_v15  ;;  %1335 = vst [vmem:[#allocation7 + $0x58] sm:$0xff] %v1311_v38  ;;  %v1219_v7 = vadd.f32 %v1218_v10, %v2542_v3  ;;  %v1220_v16 = vpop.f32.mrb[11].mxu0  ;;  %v1298_v37 = vadd.f32 %v1297_v25, %v2542_v3 }
 0x23a   :  { %1333 = vst [vmem:[#allocation7 + $0x48] sm:$0xff] %v1309_v62  ;;  %v1322_v26 = vmax.f32 %v1296_v55, 0.0  ;;  %v1221_v59 = vadd.f32 %v1220_v16, %v2542_v3 }
 0x23b   :  { %v1320_v20 = vmax.f32 %v1219_v7, 0.0  ;;  %v1323_v11 = vmax.f32 %v1298_v37, 0.0 }
 0x23c   :  { %1346 = vst [vmem:[#allocation7 + $0xb0] sm:$0xff] %v1322_v26  ;;  %v1321_v6 = vmax.f32 %v1221_v59, 0.0 }
 0x23d   :  { %1344 = vst [vmem:[#allocation7 + $0xa0] sm:$0xff] %v1320_v20  ;;  %1347 = vst [vmem:[#allocation7 + $0xb8] sm:$0xff] %v1323_v11 }
 0x23e   :  { %1345 = vst [vmem:[#allocation7 + $0xa8] sm:$0xff] %v1321_v6 }
 0x23f   :  { %1536 = shalt.err (!%p1533_p6)
}
 0x240   :  { %s1537_s6 = scalar_lea.hbm %s2585_s4, 3072 }
 0x241   :  { %p1538_p7 = scmp.ne.s32.totalorder %s2585_s4, %s1537_s6  ;;  %p1541_p8 = scmp.lt.u32.totalorder %s1537_s6, %s2585_s4 }
 0x243   :  { %p1543_p9 = pnand %p1541_p8, %p1538_p7 }
 0x245   :  { %1546 = shalt.err (!%p1543_p9)
}
 0x246   :  { %1359 = dma.vmem_to_hbm [thread:$0]  %s1354_s28, 3072, %s2585_s4, [#allocation4], %s1555_s0, %s1555_s0, %s1556_s11  }
 0x247   :  { %1551 = dma.done.wait [#allocation4], 3072  }
 0x248   :  { %1552 = vsyncadd [#allocation4], 4294964224 }
 0x249   :  { %1363 = vsyncpa [#allocation3], 1 }
 0x24a   :  { %1364 = vsyncpa [#allocation6], 1 }
 0x24b   :  { %1365 = vsyncpa [#allocation4], 1 }

</bundles_post_ra>
